<compile_context>
chip_gen: v6e
topology: v6e:2x2x1
jax: 0.10.0
libtpu: 0.0.40
codegen_flags: <defaults>
</compile_context>

<pallas_src>
import jax
import jax.numpy as jnp
from jax.experimental import pallas as pl
from jax.experimental.pallas import tpu as pltpu


def _round_up(x, m):
    return (x + m - 1) // m * m


# vecs row layout (all rows zero-padded to the lane width VL):
# 0:bq 1:bv 2:bo 3:ln1g 4:ln1b 5:bf1 6:bf2 7:ln2g 8:ln2b 9:bp 10:bc
_NUM_VEC_ROWS = 11


def bert_classifier_kernel(
    x_flat_ref,   # VMEM [BT*S, H] bf16  — all token embeddings of this batch tile
    x_cls_ref,    # VMEM [BT, H]   f32   — CLS-row embeddings (q + residual)
    vlen_ref,     # VMEM [BT,1,1]  int32 — valid lengths
    wa_ref,       # VMEM [3, H, H] bf16  — Wq | Wo | Wpool
    wkv_ref,      # VMEM [H, 2H]   bf16  — [Wk | Wv] fused
    wf1_ref,      # VMEM [H, F]    bf16
    wf2_ref,      # VMEM [F, H]    bf16
    wc_ref,       # VMEM [H, CP]   bf16  — classifier weight, lane-padded to CP
    vecs_ref,     # VMEM [11, VL]  f32   — packed biases / layernorm params
    out_ref,      # VMEM [BT, CP]  f32   — lane-dense logits
):
    BT, H = x_cls_ref.shape
    M = x_flat_ref.shape[0]          # BT * S
    S = M // BT
    F = wf1_ref.shape[1]
    CP = wc_ref.shape[1]

    def vec(row, n):                 # [1, n] f32 bias / LN row
        return vecs_ref[row:row + 1, 0:n]

    xb = x_flat_ref[...]             # [M, H] bf16 (keys / values source)
    x_cls = x_cls_ref[...]           # [BT, H] f32
    xcb = x_cls.astype(jnp.bfloat16)

    # --- gen_attention_mask: attention_mask[i][:valid_length[i]] = 1 --------
    # Batched per-row form: key position j of batch row b is valid iff
    # j < valid_length[b].  (vlen clamped to >=1 as cheap NaN insurance.)
    vlen = jnp.maximum(vlen_ref[...], 1)                              # [BT,1,1]
    key_idx = jax.lax.broadcasted_iota(jnp.int32, (BT, S, 1), 1)
    attn_bias = jnp.where(key_idx < vlen, 0.0, -1e9)                  # [BT,S,1]

    # --- masked self-attention (CLS query only; exact for 1-layer stand-in) -
    scale = 1.0 / (float(H) ** 0.5)
    q = (jnp.dot(xcb, wa_ref[0], preferred_element_type=jnp.float32)
         + vec(0, H)) * scale                                         # [BT,H] f32

    # Fused K|V projection over the big [M, H] operand (one MXU matmul).
    # Key bias dropped (cancels in softmax); value bias deferred to after PV.
    kv = jnp.dot(xb, wkv_ref[...], preferred_element_type=jnp.float32)  # [M,2H]
    kv3 = kv.reshape(BT, S, 2 * H)                                       # [BT,S,2H]
    kb = kv3[:, :, :H]
    vb = kv3[:, :, H:]

    # One CLS query row per batch element -> vector-matrix products the MXU
    # cannot fill; compute as broadcast-multiply + reduce (VPU/XLU).  This is
    # O(BT*S*H), uses no block-diagonal mask and no k transpose.
    scores = jnp.sum(q[:, None, :] * kb, axis=-1, keepdims=True) + attn_bias  # [BT,S,1]
    scores = scores - jnp.max(scores, axis=1, keepdims=True)
    p = jnp.exp(scores)
    p = p * pl.reciprocal(jnp.sum(p, axis=1, keepdims=True), approx=True)

    attn = jnp.sum(p * vb, axis=1) + vec(1, H)                        # [BT,H] (+ bv once)
    attn = jnp.dot(attn.astype(jnp.bfloat16), wa_ref[1],
                   preferred_element_type=jnp.float32) + vec(2, H)

    h = x_cls + attn
    mu = h.mean(axis=-1, keepdims=True)
    var = ((h - mu) ** 2).mean(axis=-1, keepdims=True)
    h = (h - mu) * jax.lax.rsqrt(var + 1e-12) * vec(3, H) + vec(4, H)

    # --- FFN (CLS rows only) -------------------------------------------------
    # TODO(synk): jax.nn.gelu is the tanh approximation; torch nn.GELU default
    #             is the exact erf form — tiny numerical mismatch.
    f = jnp.dot(h.astype(jnp.bfloat16), wf1_ref[...],
                preferred_element_type=jnp.float32) + vec(5, F)
    f = jax.nn.gelu(f)
    f = jnp.dot(f.astype(jnp.bfloat16), wf2_ref[...],
                preferred_element_type=jnp.float32) + vec(6, H)

    h2 = h + f
    mu2 = h2.mean(axis=-1, keepdims=True)
    var2 = ((h2 - mu2) ** 2).mean(axis=-1, keepdims=True)
    h2 = (h2 - mu2) * jax.lax.rsqrt(var2 + 1e-12) * vec(7, H) + vec(8, H)

    # --- BERT pooler: tanh(W_p * h[CLS] + b_p) -------------------------------
    pooled = jnp.tanh(jnp.dot(h2.astype(jnp.bfloat16), wa_ref[2],
                              preferred_element_type=jnp.float32) + vec(9, H))

    # (dr_rate is None -> no dropout)

    # --- classifier: nn.Linear(hidden_size, num_classes), lane-dense --------
    logits = jnp.dot(pooled.astype(jnp.bfloat16), wc_ref[...],
                     preferred_element_type=jnp.float32) + vec(10, CP)
    out_ref[...] = logits.astype(out_ref.dtype)                       # [BT, CP]


def _vmem_limit_bytes():
    # v5e/v6e: 128 MiB physical VMEM -> 64 MiB scoped limit gives room for big
    # batch tiles; v7x: 64 MiB physical -> cap at ~3/4 (weight slabs are
    # single-buffered so real-BERT sizes still fit).
    try:
        cap = pltpu.get_tpu_info().vmem_capacity_bytes
    except Exception:
        cap = 128 * 1024 * 1024
    return int(min(64 * 1024 * 1024, (cap * 3) // 4))


def make_params(key, vocab=100, seq=8, hidden=128, num_classes=5, ffn=512):
    ks = jax.random.split(key, 23)

    def nrm(k, shape, scale=0.02):
        return (scale * jax.random.normal(k, shape)).astype(jnp.float32)

    H, F, C = hidden, ffn, num_classes
    return {
        "tok_emb": nrm(ks[0], (vocab, H)),
        "seg_emb": nrm(ks[1], (2, H)),
        "pos_emb": nrm(ks[2], (seq, H)),
        "wq": nrm(ks[3], (H, H)), "bq": nrm(ks[4], (H,), 0.01),
        "wk": nrm(ks[5], (H, H)), "bk": nrm(ks[6], (H,), 0.01),
        "wv": nrm(ks[7], (H, H)), "bv": nrm(ks[8], (H,), 0.01),
        "wo": nrm(ks[9], (H, H)), "bo": nrm(ks[10], (H,), 0.01),
        "ln1g": 1.0 + nrm(ks[11], (H,), 0.01), "ln1b": nrm(ks[12], (H,), 0.01),
        "wf1": nrm(ks[13], (H, F)), "bf1": nrm(ks[14], (F,), 0.01),
        "wf2": nrm(ks[15], (F, H)), "bf2": nrm(ks[16], (H,), 0.01),
        "ln2g": 1.0 + nrm(ks[17], (H,), 0.01), "ln2b": nrm(ks[18], (H,), 0.01),
        "wp": nrm(ks[19], (H, H)), "bp": nrm(ks[20], (H,), 0.01),
        "wc": nrm(ks[21], (H, C)), "bc": nrm(ks[22], (C,), 0.01),
    }


def bert_classifier_forward(token_ids, valid_length, segment_ids, params,
                            batch_tile=None):
    B, S = token_ids.shape
    H = params["tok_emb"].shape[1]
    F = params["wf1"].shape[1]
    C = params["wc"].shape[1]
    CP = _round_up(C, 128)                    # lane-dense classifier output
    VL = _round_up(max(H, F, CP), 128)        # lane width of packed bias table

    # Embedding lookups (glue, plain JAX): token + segment + position.
    x = (
        jnp.take(params["tok_emb"], token_ids, axis=0)
        + jnp.take(params["seg_emb"], segment_ids, axis=0)
        + params["pos_emb"][None, :, :]
    ).astype(jnp.float32)                                            # [B, S, H]
    x_flat = x.reshape(B * S, H).astype(jnp.bfloat16)                # keys/values source
    x_cls = x[:, 0, :]                                               # [B, H] f32
    vlen3 = valid_length.astype(jnp.int32).reshape(B, 1, 1)

    # --- pack weights into a few lane-dense slabs ----------------------------
    w_attn = jnp.stack([params["wq"], params["wo"], params["wp"]],
                       axis=0).astype(jnp.bfloat16)                  # [3, H, H]
    w_kv = jnp.concatenate([params["wk"], params["wv"]],
                           axis=1).astype(jnp.bfloat16)              # [H, 2H]
    wf1 = params["wf1"].astype(jnp.bfloat16)                         # [H, F]
    wf2 = params["wf2"].astype(jnp.bfloat16)                         # [F, H]
    w_cls = jnp.zeros((H, CP), jnp.float32).at[:, :C].set(
        params["wc"]).astype(jnp.bfloat16)                           # [H, CP]

    vec_rows = [("bq", H), ("bv", H), ("bo", H), ("ln1g", H), ("ln1b", H),
                ("bf1", F), ("bf2", H), ("ln2g", H), ("ln2b", H),
                ("bp", H), ("bc", C)]
    vecs = jnp.zeros((_NUM_VEC_ROWS, VL), jnp.float32)
    for r, (name, n) in enumerate(vec_rows):
        vecs = vecs.at[r, :n].set(params[name].reshape(-1))

    if batch_tile is None:
        # v7x has two TensorCores: split into two "parallel" grid steps when
        # each tile stays a multiple of 8 sublanes.  Single-TC v5e/v6e keep the
        # whole batch in one step (per-step overhead and MXU fill dominate).
        batch_tile = B // 2 if (B >= 16 and (B // 2) % 8 == 0) else B
    assert B % batch_tile == 0
    assert batch_tile == B or batch_tile % 8 == 0
    BT = batch_tile
    nbt = B // BT

    # Constant-index-map weight slabs: single buffer (no point double-buffering).
    wconst = dict(pipeline_mode=pl.Buffered(1))

    grid_spec = pltpu.PrefetchScalarGridSpec(
        num_scalar_prefetch=0,
        grid=(nbt,),
        in_specs=[
            pl.BlockSpec((BT * S, H), lambda i: (i, 0)),                       # x_flat
            pl.BlockSpec((BT, H), lambda i: (i, 0)),                           # x_cls
            pl.BlockSpec((BT, 1, 1), lambda i: (i, 0, 0)),                     # valid_length
            pl.BlockSpec((3, H, H), lambda i: (0, 0, 0), **wconst),            # w_attn
            pl.BlockSpec((H, 2 * H), lambda i: (0, 0), **wconst),              # w_kv
            pl.BlockSpec((H, F), lambda i: (0, 0), **wconst),                  # wf1
            pl.BlockSpec((F, H), lambda i: (0, 0), **wconst),                  # wf2
            pl.BlockSpec((H, CP), lambda i: (0, 0), **wconst),                 # w_cls
            pl.BlockSpec((_NUM_VEC_ROWS, VL), lambda i: (0, 0), **wconst),     # vecs
        ],
        out_specs=pl.BlockSpec((BT, CP), lambda i: (i, 0)),
    )

    out = pl.pallas_call(
        bert_classifier_kernel,
        out_shape=jax.ShapeDtypeStruct((B, CP), jnp.float32),
        grid_spec=grid_spec,
        compiler_params=pltpu.CompilerParams(
            dimension_semantics=("parallel",),
            vmem_limit_bytes=_vmem_limit_bytes(),
        ),
    )(x_flat, x_cls, vlen3, w_attn, w_kv, wf1, wf2, w_cls, vecs)

    return out[:, :C]                                                # [B, C]


def bert_classifier_reference(token_ids, valid_length, segment_ids, params):
    """Pure-JAX f32 reference of the same synthetic 1-layer forward."""
    B, S = token_ids.shape
    H = params["tok_emb"].shape[1]
    x = (jnp.take(params["tok_emb"], token_ids, axis=0)
         + jnp.take(params["seg_emb"], segment_ids, axis=0)
         + params["pos_emb"][None, :, :]).astype(jnp.float32)        # [B,S,H]
    x_cls = x[:, 0, :]
    q = (x_cls @ params["wq"] + params["bq"]) / jnp.sqrt(float(H))
    k = x @ params["wk"] + params["bk"]        # kernel drops bk (cancels in softmax)
    v = x @ params["wv"] + params["bv"]
    scores = jnp.einsum("bh,bsh->bs", q, k)
    mask = jnp.arange(S)[None, :] < valid_length[:, None]
    scores = jnp.where(mask, scores, -1e9)
    p = jax.nn.softmax(scores, axis=-1)
    attn = jnp.einsum("bs,bsh->bh", p, v)
    attn = attn @ params["wo"] + params["bo"]

    def ln(h, g, b):
        mu = h.mean(-1, keepdims=True)
        var = ((h - mu) ** 2).mean(-1, keepdims=True)
        return (h - mu) * jax.lax.rsqrt(var + 1e-12) * g + b

    h = ln(x_cls + attn, params["ln1g"], params["ln1b"])
    f = jax.nn.gelu(h @ params["wf1"] + params["bf1"]) @ params["wf2"] + params["bf2"]
    h2 = ln(h + f, params["ln2g"], params["ln2b"])
    pooled = jnp.tanh(h2 @ params["wp"] + params["bp"])
    return pooled @ params["wc"] + params["bc"]


if __name__ == "__main__":
    key = jax.random.PRNGKey(0)
    # Small but lane-dense shapes: H a multiple of 128 so no masked vst/vld
    # (real BERT H=768 is also a multiple of 128).
    B, S, H, C, V = 2, 8, 128, 5, 100
    kp, kt = jax.random.split(key, 2)

    params = make_params(kp, vocab=V, seq=S, hidden=H, num_classes=C, ffn=4 * H)

    token_ids = jax.random.randint(kt, (B, S), 0, V, dtype=jnp.int32)
    segment_ids = jnp.zeros((B, S), dtype=jnp.int32)
    valid_length = jnp.array([5, 8], dtype=jnp.int32)   # mask: first 5 / 8 tokens valid

    logits = bert_classifier_forward(token_ids, valid_length, segment_ids, params)
    jax.block_until_ready(logits)
    assert logits.shape == (B, C) and logits.dtype == jnp.float32
    assert bool(jnp.all(jnp.isfinite(logits)))

    ref = bert_classifier_reference(token_ids, valid_length, segment_ids, params)
    max_err = float(jnp.max(jnp.abs(logits - ref)))
    assert max_err < 2e-2, f"kernel vs reference mismatch: max_err={max_err}"

    print("KERNEL_OK")
</pallas_src>

<mosaic_0001>
module attributes {stable_mosaic.version = 11 : i64} {
  func.func @bert_classifier_kernel(%arg0: i32, %arg1: memref<16x128xbf16, #tpu.memory_space<vmem>>, %arg2: memref<2x128xf32, #tpu.memory_space<vmem>>, %arg3: memref<2x1x1xi32, #tpu.memory_space<vmem>>, %arg4: memref<3x128x128xbf16, #tpu.memory_space<vmem>>, %arg5: memref<128x256xbf16, #tpu.memory_space<vmem>>, %arg6: memref<128x512xbf16, #tpu.memory_space<vmem>>, %arg7: memref<512x128xbf16, #tpu.memory_space<vmem>>, %arg8: memref<128x128xbf16, #tpu.memory_space<vmem>>, %arg9: memref<11x512xf32, #tpu.memory_space<vmem>>, %arg10: memref<2x128xf32, #tpu.memory_space<vmem>>) attributes {dimension_semantics = [#tpu.dimension_semantics<parallel>], iteration_bounds = array<i64: 1>, scalar_prefetch = 0 : i64, scratch_operands = 0 : i64, tpu.core_type = #tpu.core_type<tc>, window_params = [{transform_indices = @transform_0, window_bounds = array<i64: 16, 128>}, {transform_indices = @transform_1, window_bounds = array<i64: 2, 128>}, {transform_indices = @transform_2, window_bounds = array<i64: 2, 1, 1>}, {pipeline_mode = #tpu.pipeline_mode<synchronous>, transform_indices = @transform_3, window_bounds = array<i64: 3, 128, 128>}, {pipeline_mode = #tpu.pipeline_mode<synchronous>, transform_indices = @transform_4, window_bounds = array<i64: 128, 256>}, {pipeline_mode = #tpu.pipeline_mode<synchronous>, transform_indices = @transform_5, window_bounds = array<i64: 128, 512>}, {pipeline_mode = #tpu.pipeline_mode<synchronous>, transform_indices = @transform_6, window_bounds = array<i64: 512, 128>}, {pipeline_mode = #tpu.pipeline_mode<synchronous>, transform_indices = @transform_7, window_bounds = array<i64: 128, 128>}, {pipeline_mode = #tpu.pipeline_mode<synchronous>, transform_indices = @transform_8, window_bounds = array<i64: 11, 512>}, {transform_indices = @transform_9, window_bounds = array<i64: 2, 128>}]} {
    %c0 = arith.constant 0 : index
    %c0_0 = arith.constant 0 : index
    %0 = vector.load %arg1[%c0, %c0_0] : memref<16x128xbf16, #tpu.memory_space<vmem>>, vector<16x128xbf16>
    %c0_1 = arith.constant 0 : index
    %c0_2 = arith.constant 0 : index
    %1 = vector.load %arg2[%c0_1, %c0_2] : memref<2x128xf32, #tpu.memory_space<vmem>>, vector<2x128xf32>
    %2 = arith.truncf %1 : vector<2x128xf32> to vector<2x128xbf16>
    %c0_3 = arith.constant 0 : index
    %c0_4 = arith.constant 0 : index
    %c0_5 = arith.constant 0 : index
    %3 = vector.load %arg3[%c0_3, %c0_4, %c0_5] : memref<2x1x1xi32, #tpu.memory_space<vmem>>, vector<2x1x1xi32>
    %c1_i32 = arith.constant 1 : i32
    %4 = vector.broadcast %c1_i32 : i32 to vector<2x1x1xi32>
    %5 = arith.maxsi %3, %4 : vector<2x1x1xi32>
    %6 = tpu.iota {dimensions = array<i32: 1>} : vector<2x8x1xi32>
    %7 = vector.broadcast %5 : vector<2x1x1xi32> to vector<2x8x1xi32>
    %8 = arith.cmpi slt, %6, %7 : vector<2x8x1xi32>
    %cst = arith.constant 0.000000e+00 : f32
    %cst_6 = arith.constant -1.000000e+09 : f32
    %9 = vector.broadcast %cst : f32 to vector<2x8x1xf32>
    %10 = vector.broadcast %cst_6 : f32 to vector<2x8x1xf32>
    %11 = arith.select %8, %9, %10 : vector<2x8x1xi1>, vector<2x8x1xf32>
    %c0_7 = arith.constant 0 : index
    %c0_8 = arith.constant 0 : index
    %c0_9 = arith.constant 0 : index
    %12 = vector.load %arg4[%c0_7, %c0_8, %c0_9] : memref<3x128x128xbf16, #tpu.memory_space<vmem>>, vector<1x128x128xbf16>
    %13 = vector.shape_cast %12 : vector<1x128x128xbf16> to vector<128x128xbf16>
    %cst_10 = arith.constant dense<0.000000e+00> : vector<2x128xf32>
    %14 = tpu.matmul %2, %13, %cst_10 {dimension_numbers = #tpu.dot_dimension_numbers<[1], [0], [0], [1], [0, 0, 1, 1], [], []>} : vector<2x128xbf16>, vector<128x128xbf16>, vector<2x128xf32> -> vector<2x128xf32>
    %c0_11 = arith.constant 0 : index
    %c0_12 = arith.constant 0 : index
    %15 = vector.load %arg9[%c0_11, %c0_12] : memref<11x512xf32, #tpu.memory_space<vmem>>, vector<1x128xf32>
    %16 = vector.broadcast %15 : vector<1x128xf32> to vector<2x128xf32>
    %17 = arith.addf %14, %16 : vector<2x128xf32>
    %cst_13 = arith.constant 0.0883883461 : f32
    %18 = vector.broadcast %cst_13 : f32 to vector<2x128xf32>
    %19 = arith.mulf %17, %18 : vector<2x128xf32>
    %c0_14 = arith.constant 0 : index
    %c0_15 = arith.constant 0 : index
    %20 = vector.load %arg5[%c0_14, %c0_15] : memref<128x256xbf16, #tpu.memory_space<vmem>>, vector<128x256xbf16>
    %cst_16 = arith.constant dense<0.000000e+00> : vector<16x256xf32>
    %21 = tpu.matmul %0, %20, %cst_16 {dimension_numbers = #tpu.dot_dimension_numbers<[1], [0], [0], [1], [0, 0, 1, 1], [], []>} : vector<16x128xbf16>, vector<128x256xbf16>, vector<16x256xf32> -> vector<16x256xf32>
    %22 = vector.shape_cast %21 : vector<16x256xf32> to vector<2x8x256xf32>
    %23 = vector.extract_strided_slice %22 {offsets = [0, 0, 0], sizes = [2, 8, 128], strides = [1, 1, 1]} : vector<2x8x256xf32> to vector<2x8x128xf32>
    %24 = vector.extract_strided_slice %22 {offsets = [0, 0, 128], sizes = [2, 8, 128], strides = [1, 1, 1]} : vector<2x8x256xf32> to vector<2x8x128xf32>
    %25 = vector.shape_cast %19 : vector<2x128xf32> to vector<2x1x128xf32>
    %26 = vector.broadcast %25 : vector<2x1x128xf32> to vector<2x8x128xf32>
    %27 = arith.mulf %26, %23 : vector<2x8x128xf32>
    %cst_17 = arith.constant dense<0.000000e+00> : vector<2x8xf32>
    %28 = vector.multi_reduction <add>, %27, %cst_17 [2] : vector<2x8x128xf32> to vector<2x8xf32>
    %29 = vector.shape_cast %28 : vector<2x8xf32> to vector<2x8x1xf32>
    %30 = arith.addf %29, %11 : vector<2x8x1xf32>
    %cst_18 = arith.constant dense<0xFF800000> : vector<2x1xf32>
    %31 = vector.multi_reduction <maximumf>, %30, %cst_18 [1] : vector<2x8x1xf32> to vector<2x1xf32>
    %32 = vector.shape_cast %31 : vector<2x1xf32> to vector<2x1x1xf32>
    %33 = vector.broadcast %32 : vector<2x1x1xf32> to vector<2x8x1xf32>
    %34 = arith.subf %30, %33 : vector<2x8x1xf32>
    %35 = math.exp %34 : vector<2x8x1xf32>
    %cst_19 = arith.constant dense<0.000000e+00> : vector<2x1xf32>
    %36 = vector.multi_reduction <add>, %35, %cst_19 [1] : vector<2x8x1xf32> to vector<2x1xf32>
    %37 = vector.shape_cast %36 : vector<2x1xf32> to vector<2x1x1xf32>
    %38 = tpu.reciprocal %37 {approx = true} : vector<2x1x1xf32> -> vector<2x1x1xf32>
    %39 = vector.broadcast %38 : vector<2x1x1xf32> to vector<2x8x1xf32>
    %40 = arith.mulf %35, %39 : vector<2x8x1xf32>
    %41 = vector.broadcast %40 : vector<2x8x1xf32> to vector<2x8x128xf32>
    %42 = arith.mulf %41, %24 : vector<2x8x128xf32>
    %cst_20 = arith.constant dense<0.000000e+00> : vector<2x128xf32>
    %43 = vector.multi_reduction <add>, %42, %cst_20 [1] : vector<2x8x128xf32> to vector<2x128xf32>
    %c1 = arith.constant 1 : index
    %c0_21 = arith.constant 0 : index
    %44 = vector.load %arg9[%c1, %c0_21] : memref<11x512xf32, #tpu.memory_space<vmem>>, vector<1x128xf32>
    %45 = vector.broadcast %44 : vector<1x128xf32> to vector<2x128xf32>
    %46 = arith.addf %43, %45 : vector<2x128xf32>
    %47 = arith.truncf %46 : vector<2x128xf32> to vector<2x128xbf16>
    %c1_22 = arith.constant 1 : index
    %c0_23 = arith.constant 0 : index
    %c0_24 = arith.constant 0 : index
    %48 = vector.load %arg4[%c1_22, %c0_23, %c0_24] : memref<3x128x128xbf16, #tpu.memory_space<vmem>>, vector<1x128x128xbf16>
    %49 = vector.shape_cast %48 : vector<1x128x128xbf16> to vector<128x128xbf16>
    %cst_25 = arith.constant dense<0.000000e+00> : vector<2x128xf32>
    %50 = tpu.matmul %47, %49, %cst_25 {dimension_numbers = #tpu.dot_dimension_numbers<[1], [0], [0], [1], [0, 0, 1, 1], [], []>} : vector<2x128xbf16>, vector<128x128xbf16>, vector<2x128xf32> -> vector<2x128xf32>
    %c2 = arith.constant 2 : index
    %c0_26 = arith.constant 0 : index
    %51 = vector.load %arg9[%c2, %c0_26] : memref<11x512xf32, #tpu.memory_space<vmem>>, vector<1x128xf32>
    %52 = vector.broadcast %51 : vector<1x128xf32> to vector<2x128xf32>
    %53 = arith.addf %50, %52 : vector<2x128xf32>
    %54 = arith.addf %1, %53 : vector<2x128xf32>
    %cst_27 = arith.constant dense<0.000000e+00> : vector<2xf32>
    %55 = vector.multi_reduction <add>, %54, %cst_27 [1] : vector<2x128xf32> to vector<2xf32>
    %56 = vector.shape_cast %55 : vector<2xf32> to vector<2x1xf32>
    %cst_28 = arith.constant 1.280000e+02 : f32
    %57 = vector.broadcast %cst_28 : f32 to vector<2x1xf32>
    %58 = arith.divf %56, %57 : vector<2x1xf32>
    %59 = vector.broadcast %58 : vector<2x1xf32> to vector<2x128xf32>
    %60 = arith.subf %54, %59 : vector<2x128xf32>
    %61 = arith.mulf %60, %60 : vector<2x128xf32>
    %cst_29 = arith.constant dense<0.000000e+00> : vector<2xf32>
    %62 = vector.multi_reduction <add>, %61, %cst_29 [1] : vector<2x128xf32> to vector<2xf32>
    %63 = vector.shape_cast %62 : vector<2xf32> to vector<2x1xf32>
    %cst_30 = arith.constant 1.280000e+02 : f32
    %64 = vector.broadcast %cst_30 : f32 to vector<2x1xf32>
    %65 = arith.divf %63, %64 : vector<2x1xf32>
    %66 = vector.broadcast %58 : vector<2x1xf32> to vector<2x128xf32>
    %67 = arith.subf %54, %66 : vector<2x128xf32>
    %cst_31 = arith.constant 9.99999996E-13 : f32
    %68 = vector.broadcast %cst_31 : f32 to vector<2x1xf32>
    %69 = arith.addf %65, %68 : vector<2x1xf32>
    %70 = math.rsqrt %69 : vector<2x1xf32>
    %71 = vector.broadcast %70 : vector<2x1xf32> to vector<2x128xf32>
    %72 = arith.mulf %67, %71 : vector<2x128xf32>
    %c3 = arith.constant 3 : index
    %c0_32 = arith.constant 0 : index
    %73 = vector.load %arg9[%c3, %c0_32] : memref<11x512xf32, #tpu.memory_space<vmem>>, vector<1x128xf32>
    %74 = vector.broadcast %73 : vector<1x128xf32> to vector<2x128xf32>
    %75 = arith.mulf %72, %74 : vector<2x128xf32>
    %c4 = arith.constant 4 : index
    %c0_33 = arith.constant 0 : index
    %76 = vector.load %arg9[%c4, %c0_33] : memref<11x512xf32, #tpu.memory_space<vmem>>, vector<1x128xf32>
    %77 = vector.broadcast %76 : vector<1x128xf32> to vector<2x128xf32>
    %78 = arith.addf %75, %77 : vector<2x128xf32>
    %79 = arith.truncf %78 : vector<2x128xf32> to vector<2x128xbf16>
    %c0_34 = arith.constant 0 : index
    %c0_35 = arith.constant 0 : index
    %80 = vector.load %arg6[%c0_34, %c0_35] : memref<128x512xbf16, #tpu.memory_space<vmem>>, vector<128x512xbf16>
    %cst_36 = arith.constant dense<0.000000e+00> : vector<2x512xf32>
    %81 = tpu.matmul %79, %80, %cst_36 {dimension_numbers = #tpu.dot_dimension_numbers<[1], [0], [0], [1], [0, 0, 1, 1], [], []>} : vector<2x128xbf16>, vector<128x512xbf16>, vector<2x512xf32> -> vector<2x512xf32>
    %c5 = arith.constant 5 : index
    %c0_37 = arith.constant 0 : index
    %82 = vector.load %arg9[%c5, %c0_37] : memref<11x512xf32, #tpu.memory_space<vmem>>, vector<1x512xf32>
    %83 = vector.broadcast %82 : vector<1x512xf32> to vector<2x512xf32>
    %84 = arith.addf %81, %83 : vector<2x512xf32>
    %85 = arith.mulf %84, %84 : vector<2x512xf32>
    %86 = arith.mulf %84, %85 : vector<2x512xf32>
    %cst_38 = arith.constant 4.471500e-02 : f32
    %87 = vector.broadcast %cst_38 : f32 to vector<2x512xf32>
    %88 = arith.mulf %87, %86 : vector<2x512xf32>
    %89 = arith.addf %84, %88 : vector<2x512xf32>
    %cst_39 = arith.constant 0.797884583 : f32
    %90 = vector.broadcast %cst_39 : f32 to vector<2x512xf32>
    %91 = arith.mulf %90, %89 : vector<2x512xf32>
    %92 = math.tanh %91 : vector<2x512xf32>
    %cst_40 = arith.constant 1.000000e+00 : f32
    %93 = vector.broadcast %cst_40 : f32 to vector<2x512xf32>
    %94 = arith.addf %93, %92 : vector<2x512xf32>
    %cst_41 = arith.constant 5.000000e-01 : f32
    %95 = vector.broadcast %cst_41 : f32 to vector<2x512xf32>
    %96 = arith.mulf %95, %94 : vector<2x512xf32>
    %97 = arith.mulf %84, %96 : vector<2x512xf32>
    %98 = arith.truncf %97 : vector<2x512xf32> to vector<2x512xbf16>
    %c0_42 = arith.constant 0 : index
    %c0_43 = arith.constant 0 : index
    %99 = vector.load %arg7[%c0_42, %c0_43] : memref<512x128xbf16, #tpu.memory_space<vmem>>, vector<512x128xbf16>
    %cst_44 = arith.constant dense<0.000000e+00> : vector<2x128xf32>
    %100 = tpu.matmul %98, %99, %cst_44 {dimension_numbers = #tpu.dot_dimension_numbers<[1], [0], [0], [1], [0, 0, 1, 1], [], []>} : vector<2x512xbf16>, vector<512x128xbf16>, vector<2x128xf32> -> vector<2x128xf32>
    %c6 = arith.constant 6 : index
    %c0_45 = arith.constant 0 : index
    %101 = vector.load %arg9[%c6, %c0_45] : memref<11x512xf32, #tpu.memory_space<vmem>>, vector<1x128xf32>
    %102 = vector.broadcast %101 : vector<1x128xf32> to vector<2x128xf32>
    %103 = arith.addf %100, %102 : vector<2x128xf32>
    %104 = arith.addf %78, %103 : vector<2x128xf32>
    %cst_46 = arith.constant dense<0.000000e+00> : vector<2xf32>
    %105 = vector.multi_reduction <add>, %104, %cst_46 [1] : vector<2x128xf32> to vector<2xf32>
    %106 = vector.shape_cast %105 : vector<2xf32> to vector<2x1xf32>
    %cst_47 = arith.constant 1.280000e+02 : f32
    %107 = vector.broadcast %cst_47 : f32 to vector<2x1xf32>
    %108 = arith.divf %106, %107 : vector<2x1xf32>
    %109 = vector.broadcast %108 : vector<2x1xf32> to vector<2x128xf32>
    %110 = arith.subf %104, %109 : vector<2x128xf32>
    %111 = arith.mulf %110, %110 : vector<2x128xf32>
    %cst_48 = arith.constant dense<0.000000e+00> : vector<2xf32>
    %112 = vector.multi_reduction <add>, %111, %cst_48 [1] : vector<2x128xf32> to vector<2xf32>
    %113 = vector.shape_cast %112 : vector<2xf32> to vector<2x1xf32>
    %cst_49 = arith.constant 1.280000e+02 : f32
    %114 = vector.broadcast %cst_49 : f32 to vector<2x1xf32>
    %115 = arith.divf %113, %114 : vector<2x1xf32>
    %116 = vector.broadcast %108 : vector<2x1xf32> to vector<2x128xf32>
    %117 = arith.subf %104, %116 : vector<2x128xf32>
    %cst_50 = arith.constant 9.99999996E-13 : f32
    %118 = vector.broadcast %cst_50 : f32 to vector<2x1xf32>
    %119 = arith.addf %115, %118 : vector<2x1xf32>
    %120 = math.rsqrt %119 : vector<2x1xf32>
    %121 = vector.broadcast %120 : vector<2x1xf32> to vector<2x128xf32>
    %122 = arith.mulf %117, %121 : vector<2x128xf32>
    %c7 = arith.constant 7 : index
    %c0_51 = arith.constant 0 : index
    %123 = vector.load %arg9[%c7, %c0_51] : memref<11x512xf32, #tpu.memory_space<vmem>>, vector<1x128xf32>
    %124 = vector.broadcast %123 : vector<1x128xf32> to vector<2x128xf32>
    %125 = arith.mulf %122, %124 : vector<2x128xf32>
    %c8 = arith.constant 8 : index
    %c0_52 = arith.constant 0 : index
    %126 = vector.load %arg9[%c8, %c0_52] : memref<11x512xf32, #tpu.memory_space<vmem>>, vector<1x128xf32>
    %127 = vector.broadcast %126 : vector<1x128xf32> to vector<2x128xf32>
    %128 = arith.addf %125, %127 : vector<2x128xf32>
    %129 = arith.truncf %128 : vector<2x128xf32> to vector<2x128xbf16>
    %c2_53 = arith.constant 2 : index
    %c0_54 = arith.constant 0 : index
    %c0_55 = arith.constant 0 : index
    %130 = vector.load %arg4[%c2_53, %c0_54, %c0_55] : memref<3x128x128xbf16, #tpu.memory_space<vmem>>, vector<1x128x128xbf16>
    %131 = vector.shape_cast %130 : vector<1x128x128xbf16> to vector<128x128xbf16>
    %cst_56 = arith.constant dense<0.000000e+00> : vector<2x128xf32>
    %132 = tpu.matmul %129, %131, %cst_56 {dimension_numbers = #tpu.dot_dimension_numbers<[1], [0], [0], [1], [0, 0, 1, 1], [], []>} : vector<2x128xbf16>, vector<128x128xbf16>, vector<2x128xf32> -> vector<2x128xf32>
    %c9 = arith.constant 9 : index
    %c0_57 = arith.constant 0 : index
    %133 = vector.load %arg9[%c9, %c0_57] : memref<11x512xf32, #tpu.memory_space<vmem>>, vector<1x128xf32>
    %134 = vector.broadcast %133 : vector<1x128xf32> to vector<2x128xf32>
    %135 = arith.addf %132, %134 : vector<2x128xf32>
    %136 = math.tanh %135 : vector<2x128xf32>
    %137 = arith.truncf %136 : vector<2x128xf32> to vector<2x128xbf16>
    %c0_58 = arith.constant 0 : index
    %c0_59 = arith.constant 0 : index
    %138 = vector.load %arg8[%c0_58, %c0_59] : memref<128x128xbf16, #tpu.memory_space<vmem>>, vector<128x128xbf16>
    %cst_60 = arith.constant dense<0.000000e+00> : vector<2x128xf32>
    %139 = tpu.matmul %137, %138, %cst_60 {dimension_numbers = #tpu.dot_dimension_numbers<[1], [0], [0], [1], [0, 0, 1, 1], [], []>} : vector<2x128xbf16>, vector<128x128xbf16>, vector<2x128xf32> -> vector<2x128xf32>
    %c10 = arith.constant 10 : index
    %c0_61 = arith.constant 0 : index
    %140 = vector.load %arg9[%c10, %c0_61] : memref<11x512xf32, #tpu.memory_space<vmem>>, vector<1x128xf32>
    %141 = vector.broadcast %140 : vector<1x128xf32> to vector<2x128xf32>
    %142 = arith.addf %139, %141 : vector<2x128xf32>
    %c0_62 = arith.constant 0 : index
    %c0_63 = arith.constant 0 : index
    %143 = vector.load %arg10[%c0_62, %c0_63] : memref<2x128xf32, #tpu.memory_space<vmem>>, vector<2x128xf32>
    tpu.vector_store %arg10[%c0_62, %c0_63], %142 {strides = array<i32>} : memref<2x128xf32, #tpu.memory_space<vmem>>, vector<2x128xf32>,
    return
  }
  func.func @transform_0(%arg0: i32) -> (i32, i32) {
    %c0_i32 = arith.constant 0 : i32
    %c0_i32_0 = arith.constant 0 : i32
    return %arg0, %c0_i32 : i32, i32
  }
  func.func @transform_1(%arg0: i32) -> (i32, i32) {
    %c0_i32 = arith.constant 0 : i32
    %c0_i32_0 = arith.constant 0 : i32
    return %arg0, %c0_i32 : i32, i32
  }
  func.func @transform_2(%arg0: i32) -> (i32, i32, i32) {
    %c0_i32 = arith.constant 0 : i32
    %c0_i32_0 = arith.constant 0 : i32
    %c0_i32_1 = arith.constant 0 : i32
    return %arg0, %c0_i32, %c0_i32_0 : i32, i32, i32
  }
  func.func @transform_3(%arg0: i32) -> (i32, i32, i32) {
    %c0_i32 = arith.constant 0 : i32
    %c0_i32_0 = arith.constant 0 : i32
    %c0_i32_1 = arith.constant 0 : i32
    %c0_i32_2 = arith.constant 0 : i32
    return %c0_i32, %c0_i32_0, %c0_i32_1 : i32, i32, i32
  }
  func.func @transform_4(%arg0: i32) -> (i32, i32) {
    %c0_i32 = arith.constant 0 : i32
    %c0_i32_0 = arith.constant 0 : i32
    %c0_i32_1 = arith.constant 0 : i32
    return %c0_i32, %c0_i32_0 : i32, i32
  }
  func.func @transform_5(%arg0: i32) -> (i32, i32) {
    %c0_i32 = arith.constant 0 : i32
    %c0_i32_0 = arith.constant 0 : i32
    %c0_i32_1 = arith.constant 0 : i32
    return %c0_i32, %c0_i32_0 : i32, i32
  }
  func.func @transform_6(%arg0: i32) -> (i32, i32) {
    %c0_i32 = arith.constant 0 : i32
    %c0_i32_0 = arith.constant 0 : i32
    %c0_i32_1 = arith.constant 0 : i32
    return %c0_i32, %c0_i32_0 : i32, i32
  }
  func.func @transform_7(%arg0: i32) -> (i32, i32) {
    %c0_i32 = arith.constant 0 : i32
    %c0_i32_0 = arith.constant 0 : i32
    %c0_i32_1 = arith.constant 0 : i32
    return %c0_i32, %c0_i32_0 : i32, i32
  }
  func.func @transform_8(%arg0: i32) -> (i32, i32) {
    %c0_i32 = arith.constant 0 : i32
    %c0_i32_0 = arith.constant 0 : i32
    %c0_i32_1 = arith.constant 0 : i32
    return %c0_i32, %c0_i32_0 : i32, i32
  }
  func.func @transform_9(%arg0: i32) -> (i32, i32) {
    %c0_i32 = arith.constant 0 : i32
    %c0_i32_0 = arith.constant 0 : i32
    return %arg0, %c0_i32 : i32, i32
  }
}

</mosaic_0001>

<bundles_post_ra>
// kernel: tpu_custom_call.1
= control target key start
LH: loop header
LB: loop body
LE: loop exit
PB: predicated region body
PF: predicated region fallthrough
CT: control target
= control target key end

     0   :  { %14 = vsyncpa [#allocation3], 0  ;;  %s2397_s0 = inlined_call_operand.hbm [shape: bf16[16,128], index: 0, kind: input, shape index: {}]   ;;  %s2398_s1 = inlined_call_operand.vmem [shape: f32[2,128], index: 1, kind: input, shape index: {}]   ;;  %s2399_s2 = inlined_call_operand.vmem [shape: s32[2,1,1], index: 2, kind: input, shape index: {}]   ;;  %s2400_s3 = inlined_call_operand.hbm [shape: bf16[3,128,128], index: 3, kind: input, shape index: {}]   ;;  %s2401_s4 = inlined_call_operand.hbm [shape: bf16[128,256], index: 4, kind: input, shape index: {}]   ;;  %s2402_s5 = inlined_call_operand.hbm [shape: bf16[128,512], index: 5, kind: input, shape index: {}]   ;;  %s2403_s6 = inlined_call_operand.hbm [shape: bf16[512,128], index: 6, kind: input, shape index: {}]   ;;  %s2404_s7 = inlined_call_operand.hbm [shape: bf16[128,128], index: 7, kind: input, shape index: {}]   ;;  %s2405_s8 = inlined_call_operand.hbm [shape: f32[11,512], index: 8, kind: input, shape index: {}]   ;;  %s2406_s9 = inlined_call_operand.hbm [shape: f32[2,128], index: 9, kind: output, shape index: {}]  }
   0x1   :  { %15 = vsyncpa [#allocation6], 0 }
   0x2   :  { %16 = vsyncpa [#allocation9], 0 }
   0x3   :  { %17 = vsyncpa [#allocation12], 0 }
   0x4   :  { %18 = vsyncpa [#allocation4], 0  ;;  %s2199_s30 = smov [#allocation5]   ;;  %s2200_s11 = smov [#allocation8]  }
   0x5   :  { %s40_s10 = sshll.u32 %s2199_s30, 4  ;;  %s64_s12 = sshll.u32 %s2200_s11, 4  ;;  %s41_s10 = int_to_ptr.vmem [resolvable:$true] %s40_s10  ;;  %s65_s12 = int_to_ptr.vmem [resolvable:$true] %s64_s12 }
   0x6   :  { %s2037_s13 = scalar_lea.vmem %s41_s10, 3072  ;;  %p2042_p1 = scmp.lt.s32.totalorder %s41_s10, %s41_s10 }
   0x7   :  { %p2038_p0 = scmp.ne.s32.totalorder %s41_s10, %s2037_s13  ;;  %p2043_p2 = scmp.lt.s32.totalorder %s2037_s13, %s2037_s13 }
   0x9   :  { %p2044_p3 = por %p2043_p2, %p2042_p1 }
   0xb   :  { %p2045_p4 = pnand %p2044_p3, %p2038_p0 }
   0xd   :  { %2048 = shalt.err (!%p2045_p4)
}
   0xe   :  { %s2201_s14 = smov 64   ;;  %s2202_s15 = smov 4  }
   0xf   :  { %46 = dma.hbm_to_vmem [thread:$0]  %s2400_s3, 3072, %s41_s10, [#allocation6], %s2201_s14, %s2201_s14, %s2202_s15  }
  0x10   :  { %s2057_s18 = scalar_lea.vmem %s65_s12, 4096  ;;  %p2062_p6 = scmp.lt.s32.totalorder %s65_s12, %s65_s12 }
  0x11   :  { %p2058_p5 = scmp.ne.s32.totalorder %s65_s12, %s2057_s18  ;;  %p2063_p7 = scmp.lt.s32.totalorder %s2057_s18, %s2057_s18 }
  0x13   :  { %p2064_p8 = por %p2063_p7, %p2062_p6 }
  0x15   :  { %p2065_p9 = pnand %p2064_p8, %p2058_p5 }
  0x17   :  { %2068 = shalt.err (!%p2065_p9)
}
  0x18   :  { %s2203_s19 = smov 256   ;;  %s2204_s20 = smov 16  }
  0x19   :  { %70 = dma.hbm_to_vmem [thread:$0]  %s2402_s5, 4096, %s65_s12, [#allocation9], %s2203_s19, %s2203_s19, %s2204_s20  }
  0x1a   :  { %s2205_s23 = smov [#allocation11]   ;;  %s2206_s25 = smov [#allocation2]  }
  0x1b   :  { %s88_s24 = sshll.u32 %s2205_s23, 4  ;;  %s24_s26 = sshll.u32 %s2206_s25, 4  ;;  %s89_s24 = int_to_ptr.vmem [resolvable:$true] %s88_s24  ;;  %s25_s26 = int_to_ptr.vmem [resolvable:$true] %s24_s26 }
  0x1c   :  { %s2077_s3 = scalar_lea.vmem %s89_s24, 1024  ;;  %p2082_p11 = scmp.lt.s32.totalorder %s89_s24, %s89_s24 }
  0x1d   :  { %p2078_p10 = scmp.ne.s32.totalorder %s89_s24, %s2077_s3  ;;  %p2083_p12 = scmp.lt.s32.totalorder %s2077_s3, %s2077_s3 }
  0x1f   :  { %p2084_p13 = por %p2083_p12, %p2082_p11 }
  0x21   :  { %p2085_p0 = pnand %p2084_p13, %p2078_p10 }
  0x23   :  { %2088 = shalt.err (!%p2085_p0)
}
  0x24   :  { %94 = dma.hbm_to_vmem [thread:$0]  %s2404_s7, 1024, %s89_s24, [#allocation12], %s2201_s14, %s2201_s14, %s2202_s15  }
  0x25   :  { %s2097_s5 = scalar_lea.vmem %s25_s26, 128  ;;  %p2102_p2 = scmp.lt.s32.totalorder %s25_s26, %s25_s26 }
  0x26   :  { %p2098_p1 = scmp.ne.s32.totalorder %s25_s26, %s2097_s5  ;;  %p2103_p3 = scmp.lt.s32.totalorder %s2097_s5, %s2097_s5 }
  0x28   :  { %p2104_p4 = por %p2103_p3, %p2102_p2 }
  0x2a   :  { %p2105_p5 = pnand %p2104_p4, %p2098_p1 }
  0x2c   :  { %2108 = shalt.err (!%p2105_p5)
}
  0x2d   :  { %30 = dma.hbm_to_vmem [thread:$0]  %s2397_s0, 128, %s25_s26, [#allocation3], %s2201_s14, %s2201_s14, %s2202_s15  }
  0x2e   :  { %s2207_s10 = smov [#allocation7]  }
  0x2f   :  { %s52_s11 = sshll.u32 %s2207_s10, 4  ;;  %s53_s11 = int_to_ptr.vmem [resolvable:$true] %s52_s11 }
  0x30   :  { %s2117_s12 = scalar_lea.vmem %s53_s11, 2048  ;;  %p2122_p7 = scmp.lt.s32.totalorder %s53_s11, %s53_s11 }
  0x31   :  { %p2118_p6 = scmp.ne.s32.totalorder %s53_s11, %s2117_s12  ;;  %p2123_p8 = scmp.lt.s32.totalorder %s2117_s12, %s2117_s12 }
  0x33   :  { %p2124_p9 = por %p2123_p8, %p2122_p7 }
  0x35   :  { %p2125_p10 = pnand %p2124_p9, %p2118_p6 }
  0x37   :  { %2128 = shalt.err (!%p2125_p10)
}
  0x38   :  { %s2208_s7 = smov 128   ;;  %s2209_s13 = smov 8  }
  0x39   :  { %58 = dma.hbm_to_vmem [thread:$0]  %s2401_s4, 2048, %s53_s11, [#allocation6], %s2208_s7, %s2208_s7, %s2209_s13  }
  0x3a   :  { %s2210_s18 = smov [#allocation10]   ;;  %s2211_s0 = smov [#allocation13]  }
  0x3b   :  { %s76_s19 = sshll.u32 %s2210_s18, 4  ;;  %s100_s20 = sshll.u32 %s2211_s0, 4  ;;  %s77_s19 = int_to_ptr.vmem [resolvable:$true] %s76_s19  ;;  %s101_s20 = int_to_ptr.vmem [resolvable:$true] %s100_s20 }
  0x3c   :  { %s2137_s21 = scalar_lea.vmem %s77_s19, 4096  ;;  %p2142_p12 = scmp.lt.s32.totalorder %s77_s19, %s77_s19 }
  0x3d   :  { %p2138_p11 = scmp.ne.s32.totalorder %s77_s19, %s2137_s21  ;;  %p2143_p13 = scmp.lt.s32.totalorder %s2137_s21, %s2137_s21 }
  0x3f   :  { %p2144_p0 = por %p2143_p13, %p2142_p12 }
  0x41   :  { %p2145_p1 = pnand %p2144_p0, %p2138_p11 }
  0x43   :  { %2148 = shalt.err (!%p2145_p1)
}
  0x44   :  { %82 = dma.hbm_to_vmem [thread:$0]  %s2403_s6, 4096, %s77_s19, [#allocation9], %s2201_s14, %s2201_s14, %s2202_s15  }
  0x45   :  { %s2157_s4 = scalar_lea.vmem %s101_s20, 1024  ;;  %p2162_p3 = scmp.lt.s32.totalorder %s101_s20, %s101_s20 }
  0x46   :  { %p2158_p2 = scmp.ne.s32.totalorder %s101_s20, %s2157_s4  ;;  %p2163_p4 = scmp.lt.s32.totalorder %s2157_s4, %s2157_s4 }
  0x48   :  { %p2164_p5 = por %p2163_p4, %p2162_p3 }
  0x4a   :  { %p2165_p6 = pnand %p2164_p5, %p2158_p2 }
  0x4c   :  { %2168 = shalt.err (!%p2165_p6)
}
  0x4d   :  { %s2212_s24 = smov 512   ;;  %s2213_s25 = smov 32  }
  0x4e   :  { %106 = dma.hbm_to_vmem [thread:$0]  %s2405_s8, 1024, %s101_s20, [#allocation12], %s2212_s24, %s2212_s24, %s2213_s25  }
  0x4f   :  { %2189 = dma.done.wait [#allocation3], 128  }
  0x50   :  { %2190 = vsyncadd [#allocation3], 4294967168 }
  0x51   :  { %2191 = dma.done.wait [#allocation6], 5120  }
  0x52   :  { %2192 = vsyncadd [#allocation6], 4294962176 }
  0x53   :  { %2193 = dma.done.wait [#allocation9], 8192  }
  0x54   :  { %2194 = vsyncadd [#allocation9], 4294959104 }
  0x55   :  { %2195 = dma.done.wait [#allocation12], 2048  }
  0x56   :  { %2196 = vsyncadd [#allocation12], 4294965248  ;;  %v2214_v0 = vmov 0.0   ;;  %vm2215_vm0 = vmmov 0   ;;  %v2216_v1 = vmov 0   ;;  %v1870_v2 = vld [vmem:[#allocation5 + $0x38] sm:$0xff]   ;;  %v139_v29 = vlaneseq }
  0x57   :  { %1767 = vmatprep.subr.bf16.mxu0 %v2214_v0  ;;  %1783 = vmatprep.mubr.msk.bf16.mxu0 %vm2215_vm0, %v2214_v0  ;;  %v1871_v3 = vld [vmem:[#allocation7 + $0x74] ss:$8 sps:$4 sm:$0xff]   ;;  %v1873_v4 = vld [vmem:[#allocation7 + $0x70] ss:$8 sps:$4 sm:$0xff]   ;;  %v1875_v6 = vld [vmem:[#allocation7 + $0x64] ss:$8 sps:$4 sm:$0xff]  }
  0x58   :  { %393 = vmatprep.mubr.bf16.mxu1 %v2216_v1  ;;  %1868 = vset.pattern.permute.xlu1 %v2216_v1  ;;  %v1874_v5 = vld [vmem:[#allocation5 + $0x30] sm:$0xff]   ;;  %v1877_v7 = vld [vmem:[#allocation7 + $0x60] ss:$8 sps:$4 sm:$0xff]   ;;  %v1883_v11 = vld [vmem:[#allocation7 + $0x44] ss:$8 sps:$4 sm:$0xff]   ;;  %v2327_v32 = vshrl.u32 %v139_v29, 7 }
  0x59   :  { %1869 = vset.pattern.permute.xlu0 %v2216_v1  ;;  %1768 = vmatpush3.bf16.msra.mxu0 %v1870_v2  ;;  %v1878_v8 = vld [vmem:[#allocation5 + $0x28] sm:$0xff]   ;;  %v1879_v9 = vld [vmem:[#allocation7 + $0x54] ss:$8 sps:$4 sm:$0xff]   ;;  %v1881_v10 = vld [vmem:[#allocation7 + $0x50] ss:$8 sps:$4 sm:$0xff]   ;;  %vm445_vm5 = vcmask 7168  }
  0x5a   :  { %361 = vmatprep.subr.bf16.mxu1 %v1871_v3  ;;  %1769 = vmatprep.subr.bf16.mxu0 %v2214_v0  ;;  %v1882_v12 = vld [vmem:[#allocation5 + $0x20] sm:$0xff]   ;;  %v1887_v14 = vld [vmem:[#allocation7 + $0x34] ss:$8 sps:$4 sm:$0xff]   ;;  %v1889_v16 = vld [vmem:[#allocation7 + $0x30] ss:$8 sps:$4 sm:$0xff]   ;;  %v2333_v46 = vsub.s32 0, %v2327_v32 }
  0x5b   :  { %362 = vmatpush1.bf16.msra.mxu1 %v1873_v4  ;;  %v1885_v13 = vld [vmem:[#allocation7 + $0x40] ss:$8 sps:$4 sm:$0xff]   ;;  %v1886_v15 = vld [vmem:[#allocation5 + $0x18] sm:$0xff]   ;;  %v1891_v17 = vld [vmem:[#allocation7 + $0x24] ss:$8 sps:$4 sm:$0xff]   ;;  %vm536_vm6 = vcmask 1041409  }
  0x5c   :  { %363 = vmatprep.subr.bf16.mxu1 %v1875_v6  ;;  %v1890_v18 = vld [vmem:[#allocation5 + $0x10] sm:$0xff]   ;;  %v1893_v19 = vld [vmem:[#allocation7 + $0x20] ss:$8 sps:$4 sm:$0xff]   ;;  %v1899_v23 = vld [vmem:[#allocation7 + $0x4] ss:$8 sps:$4 sm:$0xff]   ;;  %vm629_vm7 = vcmask 1041408  }
  0x5d   :  { %1770 = vmatpush3.bf16.msra.mxu0 %v1874_v5  ;;  %v1894_v20 = vld [vmem:[#allocation5 + $0x8] sm:$0xff]   ;;  %v1895_v21 = vld [vmem:[#allocation7 + $0x14] ss:$8 sps:$4 sm:$0xff]   ;;  %v1897_v22 = vld [vmem:[#allocation7 + $0x10] ss:$8 sps:$4 sm:$0xff]  }
  0x5e   :  { %1771 = vmatprep.subr.bf16.mxu0 %v2214_v0  ;;  %v1898_v24 = vld [vmem:[#allocation5] sm:$0xff]   ;;  %v2318_v25 = vld [vmem:[%s2398_s1] sm:$0x3]  ;;  %v2217_v30 = vmov 1966171168  }
  0x5f   :  { %364 = vmatpush1.bf16.msra.mxu1 %v1877_v7  ;;  %v1901_v26 = vld [vmem:[#allocation7] ss:$8 sps:$4 sm:$0xff]   ;;  %v132_v27 = vpack.c.bf16 %v2318_v25, %v2318_v25  ;;  %v1902_v28 = vld [vmem:[#allocation2] sm:$0xff]   ;;  %v406_v31 = vunpack.c.l.s4 %v2217_v30  ;;  %v2218_v61 = vmov -1e+09  }
  0x60   :  { %365 = vmatprep.subr.bf16.mxu1 %v1879_v9  ;;  %v169_v34 = vld [vmem:[#allocation13] ss:$0 sm:$0xff]  ;;  %v1903_v54 = vld [vmem:[#allocation5 + $0x78] sm:$0xff]  }
  0x61   :  { %1772 = vmatpush3.bf16.msra.mxu0 %v1878_v8  ;;  %v407_v33 = vunpack.c.0.s8 %v406_v31  ;;  %v134_v55 = vld [vmem:[%s2399_s2 + $0x1] sm:$0x1]  ;;  %v133_v56 = vld [vmem:[%s2399_s2] sm:$0x1]  ;;  %s2219_s2 = smov [#allocation14]  }
  0x62   :  { %1773 = vmatprep.subr.bf16.mxu0 %v2214_v0  ;;  %vm137_vm1 = vcmp.gt.s32.totalorder %v134_v55, 1  ;;  %vm135_vm2 = vcmp.gt.s32.totalorder %v133_v56, 1  ;;  %s1562_s28 = sshll.u32 %s2219_s2, 4  ;;  %s1563_s28 = int_to_ptr.vmem [resolvable:$true] %s1562_s28 }
  0x63   :  { %366 = vmatpush1.bf16.msra.mxu1 %v1881_v10  ;;  %v410_v37 = vsub.s32 %v407_v33, %v2327_v32  ;;  %v138_v57 = vsel %vm137_vm1, %v134_v55, 1  ;;  %v136_v59 = vsel %vm135_vm2, %v133_v56, 1  ;;  %s2169_s5 = scalar_lea.vmem %s1563_s28, 32  ;;  %p2174_p8 = scmp.lt.s32.totalorder %s1563_s28, %s1563_s28 }
  0x64   :  { %367 = vmatprep.subr.bf16.mxu1 %v1883_v11  ;;  %v148_v58 = vrot.slane %v138_v57, %v2333_v46  ;;  %v144_v60 = vrot.slane %v136_v59, %v2333_v46  ;;  %p2170_p7 = scmp.ne.s32.totalorder %s1563_s28, %s2169_s5  ;;  %p2175_p9 = scmp.lt.s32.totalorder %s2169_s5, %s2169_s5 }
  0x65   :  { %1774 = vmatpush3.bf16.msra.mxu0 %v1882_v12 }
  0x66   :  { %1775 = vmatprep.subr.bf16.mxu0 %v2214_v0  ;;  %vm150_vm3 = vcmp.lt.s32.totalorder %v2327_v32, %v148_v58  ;;  %vm149_vm4 = vcmp.lt.s32.totalorder %v2327_v32, %v144_v60  ;;  %p2176_p10 = por %p2175_p9, %p2174_p8 }
  0x67   :  { %368 = vmatpush1.bf16.msra.mxu1 %v1885_v13  ;;  %v152_v62 = vsel %vm150_vm3, 0.0, %v2218_v61  ;;  %v151_v3 = vsel %vm149_vm4, 0.0, %v2218_v61 }
  0x68   :  { %369 = vmatprep.subr.bf16.mxu1 %v1887_v14  ;;  %p2177_p11 = pnand %p2176_p10, %p2170_p7 }
  0x69   :  { %1776 = vmatpush3.bf16.msra.mxu0 %v1886_v15 }
  0x6a   :  { %1777 = vmatprep.subr.bf16.mxu0 %v2214_v0 }
  0x6b   :  { %370 = vmatpush1.bf16.msra.mxu1 %v1889_v16 }
  0x6c   :  { %371 = vmatprep.subr.bf16.mxu1 %v1891_v17 }
  0x6d   :  { %1778 = vmatpush3.bf16.msra.mxu0 %v1890_v18 }
  0x6e   :  { %1779 = vmatprep.subr.bf16.mxu0 %v2214_v0 }
  0x6f   :  { %372 = vmatpush1.bf16.msra.mxu1 %v1893_v19 }
  0x70   :  { %373 = vmatprep.subr.bf16.mxu1 %v1895_v21 }
  0x71   :  { %1780 = vmatpush3.bf16.msra.mxu0 %v1894_v20 }
  0x72   :  { %1781 = vmatprep.subr.bf16.mxu0 %v2214_v0 }
  0x73   :  { %374 = vmatpush1.bf16.msra.mxu1 %v1897_v22 }
  0x74   :  { %375 = vmatprep.subr.bf16.mxu1 %v1899_v23 }
  0x75   :  { %1782 = vmatpush3.bf16.msra.mxu0 %v1898_v24 }
  0x76   :  { %1787 = vmatprep.subr.bf16.mxu0 %v2214_v0 }
  0x77   :  { %376 = vmatpush1.bf16.msra.mxu1 %v1901_v26 }
  0x78   :  { %1784 = vmatmul.mubr.bf16.vlgmr.msra.gmra.mxu0 %v132_v27 }
  0x79   :  { %1803 = vmatprep.mubr.msk.bf16.mxu0 %vm2215_vm0, %v2214_v0  ;;  %1788 = vmatpush3.bf16.msra.mxu0 %v1903_v54  ;;  %v1910_v54 = vld [vmem:[#allocation5 + $0x40] sm:$0xff]  }
  0x7a   :  { %394 = vmatmul.mubr.bf16.vlgmr.msra.gmra.mxu1 %v1902_v28  ;;  %1789 = vmatprep.subr.bf16.mxu0 %v2214_v0 }
  0x7b   :  { %896 = vmatprep.mubr.bf16.mxu1 %v2216_v1 }
 0x138   :  { %v252_v35 = vpop.f32.mrf.mxu0 }
 0x139   :  { %v253_v36 = vadd.f32 %v252_v35, %v169_v34 }
 0x13a   :  { %v1785_v38 = vpop.f32.mrf.mxu0  ;;  %v395_v40 = vpop.f32.mrf.mxu1 }
 0x13b   :  { %v258_v39 = vmul.f32 0.088388346, %v253_v36 }
 0x13c   :  { %v255_v41 = vpop.f32.mrf.mxu0  ;;  %v2330_v45 = vpop.f32.mrf.mxu1 }
 0x13d   :  { %v411_v42 = vrot.slane %v258_v39, %v410_v37 }
 0x13e   :  { %v1786_v43 = vpop.f32.mrf.mxu0  ;;  %v399_v50 = vpop.f32.mrf.mxu1 }
 0x13f   :  { %v412_v44 = vcombine.high %v411_v42, %v411_v42  ;;  %v419_v47 = vrot.slane %v411_v42, %v410_v37  ;;  %v1904_v42 = vld [vmem:[#allocation5 + $0x70] sm:$0xff]  }
 0x140   :  { %1790 = vmatpush3.bf16.msra.mxu0 %v1904_v42  ;;  %v401_v55 = vpop.f32.mrf.mxu1  ;;  %v1923_v42 = vld [vmem:[#allocation8 + $0xa0] ss:$16 sps:$4 sm:$0xff]  }
 0x141   :  { %v426_v48 = vrot.slane %v412_v44, %v410_v37  ;;  %v430_v51 = vrot.slane %v419_v47, %v2333_v46  ;;  %1791 = vmatprep.subr.bf16.mxu0 %v2214_v0  ;;  %v1905_v47 = vld [vmem:[#allocation5 + $0x68] sm:$0xff]  }
 0x143   :  { %v434_v49 = vrot.slane %v426_v48, %v2333_v46  ;;  %v437_v53 = vmul.f32 %v430_v51, %v395_v40  ;;  %v1907_v51 = vld [vmem:[#allocation5 + $0x58] sm:$0xff]  }
 0x144   :  { %1792 = vmatpush3.bf16.msra.mxu0 %v1905_v47  ;;  %v1931_v47 = vld [vmem:[#allocation8 + $0x84] ss:$16 sps:$4 sm:$0xff]  }
 0x145   :  { %v438_v52 = vmul.f32 %v434_v49, %v399_v50  ;;  %1793 = vmatprep.subr.bf16.mxu0 %v2214_v0  ;;  %v1906_v50 = vld [vmem:[#allocation5 + $0x60] sm:$0xff]  }
 0x147   :  { %441 = vadd.xlane.f32.xlu0 %v438_v52  ;;  %v1908_v52 = vld [vmem:[#allocation5 + $0x50] sm:$0xff]  }
 0x148   :  { %1794 = vmatpush3.bf16.msra.mxu0 %v1906_v50  ;;  %v1937_v50 = vld [vmem:[#allocation8 + $0x64] ss:$16 sps:$4 sm:$0xff]  }
 0x149   :  { %1795 = vmatprep.subr.bf16.mxu0 %v2214_v0 }
 0x14b   :  { %439 = vadd.xlane.f32.xlu0 %v437_v53  ;;  %v1909_v53 = vld [vmem:[#allocation5 + $0x48] sm:$0xff]  }
 0x14c   :  { %1796 = vmatpush3.bf16.msra.mxu0 %v1907_v51  ;;  %v1940_v51 = vld [vmem:[#allocation8 + $0x6c] ss:$16 sps:$4 sm:$0xff]  }
 0x14d   :  { %1797 = vmatprep.subr.bf16.mxu0 %v2214_v0 }
 0x150   :  { %1798 = vmatpush3.bf16.msra.mxu0 %v1908_v52  ;;  %v1935_v52 = vld [vmem:[#allocation8 + $0x60] ss:$16 sps:$4 sm:$0xff]  }
 0x151   :  { %1799 = vmatprep.subr.bf16.mxu0 %v2214_v0 }
 0x154   :  { %1800 = vmatpush3.bf16.msra.mxu0 %v1909_v53  ;;  %v1938_v53 = vld [vmem:[#allocation8 + $0x68] ss:$16 sps:$4 sm:$0xff]  }
 0x155   :  { %1801 = vmatprep.subr.bf16.mxu0 %v2214_v0 }
 0x158   :  { %1802 = vmatpush3.bf16.msra.mxu0 %v1910_v54  ;;  %v1943_v54 = vld [vmem:[#allocation8 + $0x44] ss:$16 sps:$4 sm:$0xff]  }
 0x1d0   :  { %v442_v63 = vpop.xlane.xlu0 %441 }
 0x1d1   :  { %v444_v2 = vadd.f32 %v442_v63, %v152_v62 }
 0x1d3   :  { %v453_v4 = vsel %vm445_vm5, %v444_v2, -inf }
 0x1d4   :  { %v454_v5 = vrot.slane %v453_v4, 4  ;;  %v440_v6 = vpop.xlane.xlu0 %439 }
 0x1d5   :  { %v443_v7 = vadd.f32 %v440_v6, %v151_v3  ;;  %v508_v6 = vld [vmem:[#allocation13 + $0x1] ss:$0 sm:$0xff] }
 0x1d6   :  { %v455_v8 = vmax.f32 %v453_v4, %v454_v5 }
 0x1d7   :  { %v446_v9 = vsel %vm445_vm5, %v443_v7, -inf }
 0x1d8   :  { %v456_v10 = vrot.slane %v455_v8, 2  ;;  %v447_v11 = vrot.slane %v446_v9, 4 }
 0x1da   :  { %v457_v12 = vmax.f32 %v455_v8, %v456_v10  ;;  %v448_v13 = vmax.f32 %v446_v9, %v447_v11 }
 0x1dc   :  { %v458_v14 = vrot.slane %v457_v12, 1  ;;  %v449_v15 = vrot.slane %v448_v13, 2 }
 0x1de   :  { %v459_v16 = vmax.f32 %v457_v12, %v458_v14  ;;  %v450_v17 = vmax.f32 %v448_v13, %v449_v15 }
 0x1e0   :  { %v461_v18 = vsub.f32 %v444_v2, %v459_v16  ;;  %v451_v19 = vrot.slane %v450_v17, 1 }
 0x1e2   :  { %v464_v20 = vmul.f32 1.442695, %v461_v18  ;;  %v452_v21 = vmax.f32 %v450_v17, %v451_v19  ;;  %v530_v19 = vld [vmem:[#allocation13 + $0x2] ss:$0 sm:$0xff] }
 0x1e4   :  { %2007 = vpow2.f32 %v464_v20  ;;  %v460_v22 = vsub.f32 %v443_v7, %v452_v21 }
 0x1e6   :  { %v462_v23 = vmul.f32 1.442695, %v460_v22 }
 0x1e8   :  { %2009 = vpow2.f32 %v462_v23 }
 0x1f1   :  { %v2008_v24 = vpop.eup %2007 }
 0x1f2   :  { %v473_v26 = vsel %vm445_vm5, %v2008_v24, 0.0 }
 0x1f3   :  { %v474_v27 = vrot.slane %v473_v26, 4 }
 0x1f5   :  { %v2010_v28 = vpop.eup %2009  ;;  %v475_v29 = vadd.f32 %v474_v27, %v473_v26 }
 0x1f6   :  { %v466_v30 = vsel %vm445_vm5, %v2010_v28, 0.0 }
 0x1f7   :  { %v476_v31 = vrot.slane %v475_v29, 2  ;;  %v467_v33 = vrot.slane %v466_v30, 4 }
 0x1f9   :  { %v477_v34 = vadd.f32 %v476_v31, %v475_v29  ;;  %v468_v35 = vadd.f32 %v467_v33, %v466_v30  ;;  %v1913_v29 = vld [vmem:[#allocation8 + $0xe4] ss:$16 sps:$4 sm:$0xff]   ;;  %v1914_v30 = vld [vmem:[#allocation8 + $0xe8] ss:$16 sps:$4 sm:$0xff]   ;;  %v1916_v31 = vld [vmem:[#allocation8 + $0xec] ss:$16 sps:$4 sm:$0xff]  }
 0x1fa   :  { %v1919_v33 = vld [vmem:[#allocation8 + $0xc4] ss:$16 sps:$4 sm:$0xff]   ;;  %864 = vmatprep.subr.bf16.mxu1 %v1913_v29  ;;  %905 = vmatprep.subr.bf16.mxu0 %v1916_v31  ;;  %v1976_v31 = vld [vmem:[#allocation10 + $0xd8] sm:$0xff]  }
 0x1fb   :  { %v478_v36 = vrot.slane %v477_v34, 1  ;;  %v469_v37 = vrot.slane %v468_v35, 2  ;;  %v1974_v29 = vld [vmem:[#allocation10 + $0xa0] sm:$0xff]  }
 0x1fd   :  { %v479_v38 = vadd.f32 %v478_v36, %v477_v34  ;;  %v470_v39 = vadd.f32 %v469_v37, %v468_v35  ;;  %v1922_v34 = vld [vmem:[#allocation8 + $0xcc] ss:$16 sps:$4 sm:$0xff]   ;;  %v1920_v35 = vld [vmem:[#allocation8 + $0xc8] ss:$16 sps:$4 sm:$0xff]  }
 0x1ff   :  { %2011 = vrcp.f32 %v479_v38  ;;  %v471_v40 = vrot.slane %v470_v39, 1 }
 0x201   :  { %v472_v41 = vadd.f32 %v471_v40, %v470_v39  ;;  %v1925_v40 = vld [vmem:[#allocation8 + $0xa4] ss:$16 sps:$4 sm:$0xff]  }
 0x203   :  { %2013 = vrcp.f32 %v472_v41  ;;  %v1928_v41 = vld [vmem:[#allocation8 + $0xac] ss:$16 sps:$4 sm:$0xff]  }
 0x20c   :  { %v2012_v43 = vpop.eup %2011 }
 0x20d   :  { %v483_v44 = vmul.f32 %v2012_v43, %v2008_v24  ;;  %v1926_v43 = vld [vmem:[#allocation8 + $0xa8] ss:$16 sps:$4 sm:$0xff]  }
 0x20f   :  { %491 = vperm.xlu1 %1868, %v483_v44   ;;  %v1929_v44 = vld [vmem:[#allocation8 + $0x80] ss:$16 sps:$4 sm:$0xff]  }
 0x210   :  { %v2014_v48 = vpop.eup %2013 }
 0x211   :  { %v482_v49 = vmul.f32 %v2014_v48, %v2010_v28  ;;  %v1911_v28 = vld [vmem:[#allocation8 + $0xe0] ss:$16 sps:$4 sm:$0xff]   ;;  %v1932_v48 = vld [vmem:[#allocation8 + $0x88] ss:$16 sps:$4 sm:$0xff]  }
 0x212   :  { %865 = vmatpush1.bf16.msra.mxu1 %v1911_v28  ;;  %v1973_v28 = vld [vmem:[#allocation10 + $0x20] sm:$0xff]  }
 0x213   :  { %486 = vperm.xlu1 %1868, %v482_v49   ;;  %866 = vmatprep.subr.bf16.mxu1 %v1919_v33  ;;  %v1934_v49 = vld [vmem:[#allocation8 + $0x8c] ss:$16 sps:$4 sm:$0xff]  }
 0x214   :  { %v1977_v33 = vld [vmem:[#allocation10 + $0x18] sm:$0xff]  }
 0x28a   :  { %v492_v56 = vpop.permute.xlu1 %491 }
 0x28b   :  { %v495_v57 = vmul.f32 %v492_v56, %v401_v55  ;;  %v1946_v55 = vld [vmem:[#allocation8 + $0x4c] ss:$16 sps:$4 sm:$0xff]   ;;  %v1941_v56 = vld [vmem:[#allocation8 + $0x40] ss:$16 sps:$4 sm:$0xff]  }
 0x28d   :  { %v502_v58 = vrot.slane %v495_v57, 4 }
 0x28e   :  { %v487_v59 = vpop.permute.xlu1 %486 }
 0x28f   :  { %v503_v60 = vadd.f32 %v502_v58, %v495_v57  ;;  %v494_v61 = vmul.f32 %v487_v59, %v2330_v45  ;;  %v1944_v57 = vld [vmem:[#allocation8 + $0x48] ss:$16 sps:$4 sm:$0xff]   ;;  %v1949_v58 = vld [vmem:[#allocation8 + $0x24] ss:$16 sps:$4 sm:$0xff]   ;;  %v1952_v59 = vld [vmem:[#allocation8 + $0x2c] ss:$16 sps:$4 sm:$0xff]  }
 0x291   :  { %v504_v62 = vrot.slane %v503_v60, 2  ;;  %v496_v63 = vrot.slane %v494_v61, 4 }
 0x293   :  { %v505_v2 = vadd.f32 %v504_v62, %v503_v60  ;;  %v497_v3 = vadd.f32 %v496_v63, %v494_v61  ;;  %v1947_v60 = vld [vmem:[#allocation8 + $0x20] ss:$16 sps:$4 sm:$0xff]   ;;  %v1950_v61 = vld [vmem:[#allocation8 + $0x28] ss:$16 sps:$4 sm:$0xff]   ;;  %v1955_v62 = vld [vmem:[#allocation8 + $0x4] ss:$16 sps:$4 sm:$0xff]  }
 0x294   :  { %v1958_v63 = vld [vmem:[#allocation8 + $0xc] ss:$16 sps:$4 sm:$0xff]  }
 0x295   :  { %v506_v4 = vrot.slane %v505_v2, 1  ;;  %v498_v5 = vrot.slane %v497_v3, 2 }
 0x297   :  { %v507_v7 = vadd.f32 %v506_v4, %v505_v2  ;;  %v499_v8 = vadd.f32 %v498_v5, %v497_v3  ;;  %v1953_v2 = vld [vmem:[#allocation8] ss:$16 sps:$4 sm:$0xff]   ;;  %v1956_v3 = vld [vmem:[#allocation8 + $0x8] ss:$16 sps:$4 sm:$0xff]  }
 0x299   :  { %v510_v9 = vadd.f32 %v508_v6, %v507_v7  ;;  %v500_v10 = vrot.slane %v499_v8, 1 }
 0x29b   :  { %v512_v11 = vpack.c.bf16 %v510_v9, %v510_v9  ;;  %v501_v12 = vadd.f32 %v500_v10, %v499_v8  ;;  %v644_v8 = vld [vmem:[#allocation13 + $0x3] ss:$0 sm:$0xff]  ;;  %v646_v10 = vld [vmem:[#allocation13 + $0x4] ss:$0 sm:$0xff] }
 0x29d   :  { %v534_v13 = vunpack.c.l.b16 %v512_v11  ;;  %v509_v14 = vadd.f32 %v508_v6, %v501_v12 }
 0x29f   :  { %v511_v15 = vpack.c.bf16 %v509_v14, %v509_v14  ;;  %v535_v16 = vrot.slane %v534_v13, 7  ;;  %v1959_v14 = vld [vmem:[#allocation10 + $0x78] sm:$0xff]  }
 0x2a1   :  { %v533_v17 = vunpack.c.l.b16 %v511_v15  ;;  %v1960_v15 = vld [vmem:[#allocation10 + $0xf8] sm:$0xff]  }
 0x2a3   :  { %v537_v45 = vsel %vm536_vm6, %v535_v16, %v533_v17  ;;  %v1961_v16 = vld [vmem:[#allocation10 + $0x38] sm:$0xff]  }
 0x2a4   :  { %v538_v18 = vpack.c.b16 %v537_v45, %v537_v45  ;;  %v1962_v17 = vld [vmem:[#allocation10 + $0xb8] sm:$0xff]   ;;  %v1963_v45 = vld [vmem:[#allocation10 + $0x70] sm:$0xff]  }
 0x2a6   :  { %1804 = vmatmul.mubr.bf16.vlgmr.msra.gmra.mxu0 %v538_v18  ;;  %v1964_v18 = vld [vmem:[#allocation10 + $0xf0] sm:$0xff]  }
 0x2a7   :  { %937 = vmatprep.mubr.bf16.mxu0 %v2216_v1  ;;  %v1917_v1 = vld [vmem:[#allocation8 + $0xc0] ss:$16 sps:$4 sm:$0xff]   ;;  %906 = vmatpush1.bf16.msra.mxu0 %v1914_v30  ;;  %v1975_v30 = vld [vmem:[#allocation10 + $0x58] sm:$0xff]  }
 0x2a8   :  { %907 = vmatprep.subr.bf16.mxu0 %v1922_v34  ;;  %867 = vmatpush1.bf16.msra.mxu1 %v1917_v1  ;;  %v1978_v34 = vld [vmem:[#allocation10 + $0x98] sm:$0xff]   ;;  %v1979_v1 = vld [vmem:[#allocation10 + $0x50] sm:$0xff]  }
 0x2a9   :  { %868 = vmatprep.subr.bf16.mxu1 %v1925_v40  ;;  %v1986_v40 = vld [vmem:[#allocation10 + $0x88] sm:$0xff]  }
 0x2ab   :  { %908 = vmatpush1.bf16.msra.mxu0 %v1920_v35  ;;  %v1980_v35 = vld [vmem:[#allocation10 + $0xd0] sm:$0xff]  }
 0x2ac   :  { %909 = vmatprep.subr.bf16.mxu0 %v1928_v41  ;;  %869 = vmatpush1.bf16.msra.mxu1 %v1923_v42  ;;  %v1987_v41 = vld [vmem:[#allocation10 + $0x40] sm:$0xff]  }
 0x2ad   :  { %870 = vmatprep.subr.bf16.mxu1 %v1931_v47  ;;  %v1988_v42 = vld [vmem:[#allocation10 + $0xc0] sm:$0xff]   ;;  %v694_v47 = vsub.s32 2, %v2327_v32 }
 0x2af   :  { %910 = vmatpush1.bf16.msra.mxu0 %v1926_v43  ;;  %v1989_v43 = vld [vmem:[#allocation10] sm:$0xff]  }
 0x2b0   :  { %911 = vmatprep.subr.bf16.mxu0 %v1934_v49  ;;  %871 = vmatpush1.bf16.msra.mxu1 %v1929_v44  ;;  %v1990_v44 = vld [vmem:[#allocation10 + $0x80] sm:$0xff]   ;;  %v690_v49 = vsub.s32 1, %v2327_v32 }
 0x2b1   :  { %872 = vmatprep.subr.bf16.mxu1 %v1937_v50  ;;  %v698_v50 = vsub.s32 3, %v2327_v32 }
 0x2b3   :  { %912 = vmatpush1.bf16.msra.mxu0 %v1932_v48  ;;  %v682_v48 = vld [vmem:[#allocation13 + $0x5] ss:$8 sm:$0xf] }
 0x2b4   :  { %913 = vmatprep.subr.bf16.mxu0 %v1940_v51  ;;  %873 = vmatpush1.bf16.msra.mxu1 %v1935_v52  ;;  %v687_v51 = vrot.slane %v682_v48, %v2333_v46  ;;  %v695_v52 = vrot.slane %v682_v48, %v694_v47  ;;  %v1050_v47 = vld [vmem:[#allocation13 + $0x6] ss:$0 sm:$0xff] }
 0x2b5   :  { %874 = vmatprep.subr.bf16.mxu1 %v1943_v54  ;;  %v699_v54 = vrot.slane %v682_v48, %v698_v50 }
 0x2b7   :  { %914 = vmatpush1.bf16.msra.mxu0 %v1938_v53  ;;  %v691_v53 = vrot.slane %v682_v48, %v690_v49 }
 0x2b8   :  { %915 = vmatprep.subr.bf16.mxu0 %v1946_v55  ;;  %875 = vmatpush1.bf16.msra.mxu1 %v1941_v56 }
 0x2b9   :  { %876 = vmatprep.subr.bf16.mxu1 %v1949_v58 }
 0x2bb   :  { %916 = vmatpush1.bf16.msra.mxu0 %v1944_v57 }
 0x2bc   :  { %917 = vmatprep.subr.bf16.mxu0 %v1952_v59  ;;  %877 = vmatpush1.bf16.msra.mxu1 %v1947_v60 }
 0x2bd   :  { %878 = vmatprep.subr.bf16.mxu1 %v1955_v62 }
 0x2bf   :  { %918 = vmatpush1.bf16.msra.mxu0 %v1950_v61 }
 0x2c0   :  { %919 = vmatprep.subr.bf16.mxu0 %v1958_v63  ;;  %879 = vmatpush1.bf16.msra.mxu1 %v1953_v2 }
 0x2c1   :  { %1705 = vmatprep.subr.bf16.mxu1 %v1959_v14 }
 0x2c3   :  { %920 = vmatpush1.bf16.msra.mxu0 %v1956_v3 }
 0x2c4   :  { %1727 = vmatprep.subr.bf16.mxu0 %v1960_v15 }
 0x366   :  { %v622_v20 = vpop.f32.mrf.mxu0 }
 0x367   :  { %v623_v21 = vadd.f32 %v622_v20, %v530_v19  ;;  %v1965_v19 = vld [vmem:[#allocation10 + $0x30] sm:$0xff]  }
 0x368   :  { %v1805_v22 = vpop.f32.mrf.mxu0  ;;  %v1966_v20 = vld [vmem:[#allocation10 + $0xb0] sm:$0xff]  }
 0x369   :  { %v628_v23 = vadd.f32 %v623_v21, %v2318_v25  ;;  %v1967_v21 = vld [vmem:[#allocation10 + $0x68] sm:$0xff]  }
 0x36a   :  { %v625_v24 = vpop.f32.mrf.mxu0  ;;  %v1968_v22 = vld [vmem:[#allocation10 + $0xe8] sm:$0xff]  }
 0x36b   :  { %v630_v26 = vsel %vm629_vm7, %v628_v23, 0.0  ;;  %v1970_v24 = vld [vmem:[#allocation10 + $0xa8] sm:$0xff]  }
 0x36c   :  { %631 = vadd.xlane.f32.xlu0 %v630_v26  ;;  %v1806_v27 = vpop.f32.mrf.mxu0  ;;  %v1971_v26 = vld [vmem:[#allocation10 + $0x60] sm:$0xff]  }
 0x36d   :  { %v1972_v27 = vld [vmem:[#allocation10 + $0xe0] sm:$0xff]  }
 0x3f5   :  { %v632_v25 = vpop.xlane.xlu0 %631 }
 0x3f6   :  { %v634_v36 = vmul.f32 0.0078125, %v632_v25  ;;  %v1981_v25 = vld [vmem:[#allocation10 + $0x10] sm:$0xff]  }
 0x3f8   :  { %v635_v37 = vsub.f32 %v628_v23, %v634_v36  ;;  %v1969_v23 = vld [vmem:[#allocation10 + $0x28] sm:$0xff]   ;;  %v1982_v36 = vld [vmem:[#allocation10 + $0x90] sm:$0xff]  }
 0x3fa   :  { %v636_v38 = vmul.f32 %v635_v37, %v635_v37 }
 0x3fc   :  { %v637_v39 = vsel %vm629_vm7, %v636_v38, 0.0  ;;  %v1984_v38 = vld [vmem:[#allocation10 + $0xc8] sm:$0xff]  }
 0x3fd   :  { %638 = vadd.xlane.f32.xlu1 %v637_v39  ;;  %v1985_v39 = vld [vmem:[#allocation10 + $0x8] sm:$0xff]  }
 0x486   :  { %v639_v4 = vpop.xlane.xlu1 %638 }
 0x487   :  { %v640_v5 = vmul.f32 0.0078125, %v639_v4 }
 0x489   :  { %v641_v6 = vadd.f32 1e-12, %v640_v5 }
 0x48b   :  { %2015 = vrsqrt.f32 %v641_v6 }
 0x498   :  { %v2016_v7 = vpop.eup %2015 }
 0x499   :  { %v643_v9 = vmul.f32 %v2016_v7, %v635_v37  ;;  %v1983_v37 = vld [vmem:[#allocation10 + $0x48] sm:$0xff]  }
 0x49b   :  { %v645_v11 = vmul.f32 %v644_v8, %v643_v9 }
 0x49d   :  { %v2363_v12 = vadd.f32 %v646_v10, %v645_v11 }
 0x49f   :  { %v648_v13 = vpack.c.bf16 %v2363_v12, %v2363_v12 }
 0x4a1   :  { %897 = vmatmul.mubr.bf16.vlgmr.msra.gmra.mxu1 %v648_v13  ;;  %938 = vmatmul.mubr.bf16.vlgmr.msra.gmra.mxu0 %v648_v13 }
 0x4a2   :  { %1706 = vmatpush3.bf16.msra.mxu1 %v1961_v16  ;;  %1728 = vmatpush3.bf16.msra.mxu0 %v1962_v17 }
 0x4a3   :  { %1707 = vmatprep.subr.bf16.mxu1 %v1963_v45  ;;  %1729 = vmatprep.subr.bf16.mxu0 %v1964_v18 }
 0x4a6   :  { %1708 = vmatpush3.bf16.msra.mxu1 %v1965_v19  ;;  %1730 = vmatpush3.bf16.msra.mxu0 %v1966_v20 }
 0x4a7   :  { %1709 = vmatprep.subr.bf16.mxu1 %v1967_v21  ;;  %1731 = vmatprep.subr.bf16.mxu0 %v1968_v22 }
 0x4aa   :  { %1710 = vmatpush3.bf16.msra.mxu1 %v1969_v23  ;;  %1732 = vmatpush3.bf16.msra.mxu0 %v1970_v24 }
 0x4ab   :  { %1711 = vmatprep.subr.bf16.mxu1 %v1971_v26  ;;  %1733 = vmatprep.subr.bf16.mxu0 %v1972_v27 }
 0x4ae   :  { %1712 = vmatpush3.bf16.msra.mxu1 %v1973_v28  ;;  %1734 = vmatpush3.bf16.msra.mxu0 %v1974_v29 }
 0x4af   :  { %1713 = vmatprep.subr.bf16.mxu1 %v1975_v30  ;;  %1735 = vmatprep.subr.bf16.mxu0 %v1976_v31 }
 0x4b2   :  { %1714 = vmatpush3.bf16.msra.mxu1 %v1977_v33  ;;  %1736 = vmatpush3.bf16.msra.mxu0 %v1978_v34 }
 0x4b3   :  { %1715 = vmatprep.subr.bf16.mxu1 %v1979_v1  ;;  %1737 = vmatprep.subr.bf16.mxu0 %v1980_v35 }
 0x4b6   :  { %1716 = vmatpush3.bf16.msra.mxu1 %v1981_v25  ;;  %1738 = vmatpush3.bf16.msra.mxu0 %v1982_v36 }
 0x4b7   :  { %1717 = vmatprep.subr.bf16.mxu1 %v1983_v37  ;;  %1739 = vmatprep.subr.bf16.mxu0 %v1984_v38 }
 0x4ba   :  { %1718 = vmatpush3.bf16.msra.mxu1 %v1985_v39  ;;  %1740 = vmatpush3.bf16.msra.mxu0 %v1986_v40 }
 0x4bb   :  { %1719 = vmatprep.subr.bf16.mxu1 %v1987_v41  ;;  %1741 = vmatprep.subr.bf16.mxu0 %v1988_v42 }
 0x4be   :  { %1720 = vmatpush3.bf16.msra.mxu1 %v1989_v43  ;;  %1742 = vmatpush3.bf16.msra.mxu0 %v1990_v44 }
 0x4bf   :  { %1807 = vmatprep.subr.bf16.mxu1 %v2214_v0  ;;  %1827 = vmatprep.subr.bf16.mxu0 %v2214_v0 }
 0x561   :  { %v898_v55 = vpop.f32.mrf.mxu1  ;;  %v939_v56 = vpop.f32.mrf.mxu0 }
 0x562   :  { %v899_v57 = vadd.f32 %v898_v55, %v687_v51  ;;  %v940_v58 = vadd.f32 %v939_v56, %v695_v52 }
 0x563   :  { %v900_v59 = vpop.f32.mrf.mxu1  ;;  %v941_v60 = vpop.f32.mrf.mxu0 }
 0x564   :  { %v946_v61 = vmul.f32 %v899_v57, %v899_v57  ;;  %v948_v62 = vmul.f32 %v940_v58, %v940_v58  ;;  %v901_v63 = vadd.f32 %v900_v59, %v691_v53  ;;  %v942_v2 = vadd.f32 %v941_v60, %v699_v54  ;;  %v1991_v60 = vld [vmem:[#allocation5 + $0xb8] sm:$0xff]  }
 0x565   :  { %v902_v3 = vpop.f32.mrf.mxu1  ;;  %v943_v4 = vpop.f32.mrf.mxu0 }
 0x566   :  { %v950_v5 = vmul.f32 %v946_v61, %v899_v57  ;;  %v952_v6 = vmul.f32 %v948_v62, %v940_v58  ;;  %v947_v32 = vmul.f32 %v901_v63, %v901_v63  ;;  %v949_v7 = vmul.f32 %v942_v2, %v942_v2  ;;  %v1992_v61 = vld [vmem:[#allocation5 + $0xb0] sm:$0xff]  }
 0x567   :  { %v903_v46 = vpop.f32.mrf.mxu1  ;;  %v944_v8 = vpop.f32.mrf.mxu0 }
 0x568   :  { %v954_v9 = vmul.f32 0.044715, %v950_v5  ;;  %v956_v10 = vmul.f32 0.044715, %v952_v6  ;;  %v951_v11 = vmul.f32 %v947_v32, %v901_v63  ;;  %v953_v13 = vmul.f32 %v949_v7, %v942_v2  ;;  %v1993_v5 = vld [vmem:[#allocation5 + $0xa8] sm:$0xff]   ;;  %v1995_v6 = vld [vmem:[#allocation5 + $0x98] sm:$0xff]  }
 0x569   :  { %v1996_v32 = vld [vmem:[#allocation5 + $0x90] sm:$0xff]   ;;  %v1997_v7 = vld [vmem:[#allocation5 + $0x88] sm:$0xff]   ;;  %v1998_v46 = vld [vmem:[#allocation5 + $0x80] sm:$0xff]  }
 0x56a   :  { %v958_v14 = vadd.f32 %v954_v9, %v899_v57  ;;  %v960_v15 = vadd.f32 %v956_v10, %v940_v58  ;;  %v955_v16 = vmul.f32 0.044715, %v951_v11  ;;  %v957_v17 = vmul.f32 0.044715, %v953_v13  ;;  %v1999_v8 = vld [vmem:[#allocation11 + $0x38] sm:$0xff]   ;;  %v2000_v9 = vld [vmem:[#allocation11 + $0x30] sm:$0xff]  }
 0x56b   :  { %v2001_v10 = vld [vmem:[#allocation11 + $0x28] sm:$0xff]  }
 0x56c   :  { %v962_v45 = vmul.f32 0.7978846, %v958_v14  ;;  %v964_v18 = vmul.f32 0.7978846, %v960_v15  ;;  %v959_v19 = vadd.f32 %v955_v16, %v901_v63  ;;  %v961_v20 = vadd.f32 %v957_v17, %v942_v2  ;;  %v1337_v16 = vld [vmem:[#allocation13 + $0x7] ss:$0 sm:$0xff] }
 0x56e   :  { %2017 = vtanh.f32 %v962_v45  ;;  %v963_v21 = vmul.f32 0.7978846, %v959_v19  ;;  %v965_v22 = vmul.f32 0.7978846, %v961_v20  ;;  %v1339_v45 = vld [vmem:[#allocation13 + $0x20] ss:$0 sm:$0xff] }
 0x56f   :  { %2019 = vtanh.f32 %v964_v18 }
 0x570   :  { %2021 = vtanh.f32 %v963_v21  ;;  %v2002_v21 = vld [vmem:[#allocation11 + $0x20] sm:$0xff]  }
 0x571   :  { %2023 = vtanh.f32 %v965_v22  ;;  %v2003_v22 = vld [vmem:[#allocation11 + $0x18] sm:$0xff]  }
 0x57b   :  { %v2018_v23 = vpop.eup %2017 }
 0x57c   :  { %v2020_v24 = vpop.eup %2019  ;;  %v970_v26 = vadd.f32 1.0, %v2018_v23  ;;  %v2004_v23 = vld [vmem:[#allocation11 + $0x10] sm:$0xff]  }
 0x57d   :  { %v2022_v27 = vpop.eup %2021  ;;  %v972_v28 = vadd.f32 1.0, %v2020_v24  ;;  %v2005_v24 = vld [vmem:[#allocation11 + $0x8] sm:$0xff]  }
 0x57e   :  { %v2024_v29 = vpop.eup %2023  ;;  %v971_v30 = vadd.f32 1.0, %v2022_v27  ;;  %v974_v31 = vmul.f32 0.5, %v970_v26  ;;  %v2006_v26 = vld [vmem:[#allocation11] sm:$0xff]  }
 0x57f   :  { %v973_v33 = vadd.f32 1.0, %v2024_v29  ;;  %v976_v34 = vmul.f32 0.5, %v972_v28  ;;  %v1359_v27 = vld [vmem:[#allocation13 + $0x21] ss:$0 sm:$0xff] }
 0x580   :  { %v975_v1 = vmul.f32 0.5, %v971_v30  ;;  %v978_v25 = vmul.f32 %v974_v31, %v899_v57 }
 0x581   :  { %v977_v35 = vmul.f32 0.5, %v973_v33  ;;  %v980_v37 = vmul.f32 %v976_v34, %v940_v58 }
 0x582   :  { %v979_v36 = vmul.f32 %v975_v1, %v901_v63  ;;  %v982_v41 = vpack.c.bf16 %v978_v25, %v978_v25 }
 0x583   :  { %v981_v38 = vmul.f32 %v977_v35, %v942_v2  ;;  %v984_v42 = vpack.c.bf16 %v980_v37, %v980_v37  ;;  %v1466_v35 = vld [vmem:[#allocation13 + $0x22] ss:$0 sm:$0xff] }
 0x584   :  { %v983_v39 = vpack.c.bf16 %v979_v36, %v979_v36 }
 0x585   :  { %v985_v40 = vpack.c.bf16 %v981_v38, %v981_v38 }
 0x586   :  { %1275 = vmatprep.mubr.bf16.mxu1 %v983_v39 }
 0x587   :  { %1315 = vmatprep.mubr.bf16.mxu0 %v985_v40  ;;  %1276 = vmatmul.mubr.bf16.vlgmr.msra.gmra.mxu1 %v982_v41 }
 0x588   :  { %1316 = vmatmul.mubr.bf16.vlgmr.msra.gmra.mxu0 %v984_v42  ;;  %1823 = vmatprep.mubr.msk.bf16.mxu1 %vm2215_vm0, %v2214_v0 }
 0x589   :  { %1843 = vmatprep.mubr.msk.bf16.mxu0 %vm2215_vm0, %v2214_v0  ;;  %1808 = vmatpush3.bf16.msra.mxu1 %v1991_v60 }
 0x58a   :  { %1809 = vmatprep.subr.bf16.mxu1 %v2214_v0  ;;  %1828 = vmatpush3.bf16.msra.mxu0 %v1999_v8 }
 0x58b   :  { %1829 = vmatprep.subr.bf16.mxu0 %v2214_v0 }
 0x58d   :  { %1810 = vmatpush3.bf16.msra.mxu1 %v1992_v61 }
 0x58e   :  { %1811 = vmatprep.subr.bf16.mxu1 %v2214_v0  ;;  %1830 = vmatpush3.bf16.msra.mxu0 %v2000_v9 }
 0x58f   :  { %1831 = vmatprep.subr.bf16.mxu0 %v2214_v0 }
 0x591   :  { %1812 = vmatpush3.bf16.msra.mxu1 %v1993_v5 }
 0x592   :  { %1813 = vmatprep.subr.bf16.mxu1 %v2214_v0  ;;  %1832 = vmatpush3.bf16.msra.mxu0 %v2001_v10 }
 0x593   :  { %1833 = vmatprep.subr.bf16.mxu0 %v2214_v0 }
 0x596   :  { %1834 = vmatpush3.bf16.msra.mxu0 %v2002_v21 }
 0x597   :  { %1835 = vmatprep.subr.bf16.mxu0 %v2214_v0 }
 0x59a   :  { %1836 = vmatpush3.bf16.msra.mxu0 %v2003_v22 }
 0x59b   :  { %1837 = vmatprep.subr.bf16.mxu0 %v2214_v0 }
 0x59e   :  { %1838 = vmatpush3.bf16.msra.mxu0 %v2004_v23 }
 0x59f   :  { %1839 = vmatprep.subr.bf16.mxu0 %v2214_v0 }
 0x5a2   :  { %1840 = vmatpush3.bf16.msra.mxu0 %v2005_v24 }
 0x5a3   :  { %1841 = vmatprep.subr.bf16.mxu0 %v2214_v0 }
 0x5a6   :  { %1842 = vmatpush3.bf16.msra.mxu0 %v2006_v26 }
 0x647   :  { %v1721_v43 = vpop.f32.mrf.mxu1 }
 0x648   :  { %v1743_v44 = vpop.f32.mrf.mxu0 }
 0x649   :  { %v1722_v48 = vpop.f32.mrf.mxu1 }
 0x64a   :  { %v1723_v49 = vadd.f32 %v1722_v48, %v1721_v43  ;;  %v1744_v50 = vpop.f32.mrf.mxu0 }
 0x64b   :  { %v1724_v51 = vpop.f32.mrf.mxu1  ;;  %v1745_v53 = vadd.f32 %v1744_v50, %v1743_v44 }
 0x64c   :  { %v1278_v52 = vadd.f32 %v1723_v49, %v1050_v47  ;;  %v1746_v54 = vpop.f32.mrf.mxu0 }
 0x64d   :  { %v1725_v55 = vpop.f32.mrf.mxu1 }
 0x64e   :  { %v1318_v56 = vadd.f32 %v1745_v53, %v1278_v52  ;;  %v1747_v57 = vpop.f32.mrf.mxu0 }
 0x650   :  { %v1323_v58 = vadd.f32 %v1318_v56, %v2363_v12  ;;  %v1994_v12 = vld [vmem:[#allocation5 + $0xa0] sm:$0xff]  }
 0x651   :  { %1814 = vmatpush3.bf16.msra.mxu1 %v1994_v12 }
 0x652   :  { %v1324_v59 = vsel %vm629_vm7, %v1323_v58, 0.0  ;;  %1815 = vmatprep.subr.bf16.mxu1 %v2214_v0 }
 0x653   :  { %1325 = vadd.xlane.f32.xlu0 %v1324_v59 }
 0x655   :  { %1816 = vmatpush3.bf16.msra.mxu1 %v1995_v6 }
 0x656   :  { %1817 = vmatprep.subr.bf16.mxu1 %v2214_v0 }
 0x659   :  { %1818 = vmatpush3.bf16.msra.mxu1 %v1996_v32 }
 0x65a   :  { %1819 = vmatprep.subr.bf16.mxu1 %v2214_v0 }
 0x65d   :  { %1820 = vmatpush3.bf16.msra.mxu1 %v1997_v7 }
 0x65e   :  { %1821 = vmatprep.subr.bf16.mxu1 %v2214_v0 }
 0x661   :  { %1822 = vmatpush3.bf16.msra.mxu1 %v1998_v46 }
 0x6dc   :  { %v1326_v62 = vpop.xlane.xlu0 %1325 }
 0x6dd   :  { %v1327_v63 = vmul.f32 0.0078125, %v1326_v62 }
 0x6df   :  { %v1328_v2 = vsub.f32 %v1323_v58, %v1327_v63 }
 0x6e1   :  { %v1329_v3 = vmul.f32 %v1328_v2, %v1328_v2 }
 0x6e3   :  { %v1330_v4 = vsel %vm629_vm7, %v1329_v3, 0.0 }
 0x6e4   :  { %1331 = vadd.xlane.f32.xlu0 %v1330_v4 }
 0x76d   :  { %v1332_v11 = vpop.xlane.xlu0 %1331 }
 0x76e   :  { %v1333_v13 = vmul.f32 0.0078125, %v1332_v11 }
 0x770   :  { %v1334_v14 = vadd.f32 1e-12, %v1333_v13 }
 0x772   :  { %2025 = vrsqrt.f32 %v1334_v14 }
 0x77f   :  { %v2026_v15 = vpop.eup %2025 }
 0x780   :  { %v1336_v17 = vmul.f32 %v2026_v15, %v1328_v2 }
 0x782   :  { %v1338_v18 = vmul.f32 %v1337_v16, %v1336_v17 }
 0x784   :  { %v1340_v19 = vadd.f32 %v1339_v45, %v1338_v18 }
 0x786   :  { %v1341_v20 = vpack.c.bf16 %v1340_v19, %v1340_v19 }
 0x788   :  { %1824 = vmatmul.mubr.bf16.vlgmr.msra.gmra.mxu1 %v1341_v20 }
 0x848   :  { %v1442_v28 = vpop.f32.mrf.mxu1 }
 0x849   :  { %v1443_v29 = vadd.f32 %v1442_v28, %v1359_v27 }
 0x84a   :  { %v1825_v30 = vpop.f32.mrf.mxu1 }
 0x84b   :  { %2027 = vtanh.f32 %v1443_v29 }
 0x84c   :  { %v1445_v31 = vpop.f32.mrf.mxu1 }
 0x84e   :  { %v1826_v33 = vpop.f32.mrf.mxu1 }
 0x858   :  { %v2028_v34 = vpop.eup %2027 }
 0x859   :  { %v1449_v1 = vpack.c.bf16 %v2028_v34, %v2028_v34 }
 0x85b   :  { %1844 = vmatmul.mubr.bf16.vlgmr.msra.gmra.mxu0 %v1449_v1 }
 0x91b   :  { %v1549_v25 = vpop.f32.mrf.mxu0 }
 0x91c   :  { %v1550_v36 = vadd.f32 %v1549_v25, %v1466_v35 }
 0x91d   :  { %v1845_v37 = vpop.f32.mrf.mxu0 }
 0x91e   :  { %1555 = vst [vmem:[#allocation14] sm:$0x3] %v1550_v36 }
 0x91f   :  { %v1552_v0 = vpop.f32.mrf.mxu0 }
 0x920   :  { %2180 = shalt.err (!%p2177_p11)
}
 0x921   :  { %1565 = dma.vmem_to_hbm [thread:$0]  %s1563_s28, 32, %s2406_s9, [#allocation4]   ;;  %v1846_v38 = vpop.f32.mrf.mxu0 }
 0x922   :  { %2197 = dma.done.wait [#allocation4], 32  }
 0x923   :  { %2198 = vsyncadd [#allocation4], 4294967264 }
 0x924   :  { %1569 = vsyncpa [#allocation3], 1 }
 0x925   :  { %1570 = vsyncpa [#allocation6], 1 }
 0x926   :  { %1571 = vsyncpa [#allocation9], 1 }
 0x927   :  { %1572 = vsyncpa [#allocation12], 1 }
 0x928   :  { %1573 = vsyncpa [#allocation4], 1 }

</bundles_post_ra>
